<compile_context>
chip_gen: v7x
topology: tpu7x:2x2x1
jax: 0.10.0
libtpu: 0.0.40
codegen_flags: <defaults>
</compile_context>

<pallas_src>
import functools

import jax
import jax.numpy as jnp
from jax.experimental import pallas as pl
from jax.experimental.pallas import tpu as pltpu


def add_conv1x1_bn_kernel(a_ref, b_ref, w_ref, gb_ref, out_ref, *, true_m):
    # a_ref, b_ref : (Cin, Mp) f32, zero-padded beyond column true_m
    # w_ref        : (Cout_tile, Cin) f32
    # gb_ref       : (Cout_tile, 2) f32  -- [:,0]=gamma, [:,1]=beta
    # out_ref      : (Cout_tile, Mp) f32
    x = a_ref[...] + b_ref[...]                              # elementwise add (VPU, f32)
    w = w_ref[...]

    # 1x1 conv == matmul: bf16 operands (MXU-native), f32 accumulation.
    y = jnp.dot(w.astype(jnp.bfloat16), x.astype(jnp.bfloat16),
                preferred_element_type=jnp.float32)          # (Cout_tile, Mp)

    inv_m = 1.0 / true_m                                     # TRUE M, not padded Mp
    # Mean via matmul identity: reduce the small (Cin, Mp) tensor, then a tiny
    # (Cout_tile, Cin) x (Cin, 1) matvec -- avoids a second full pass over y.
    sum_x = jnp.sum(x, axis=-1, keepdims=True)               # (Cin, 1), padded cols are 0
    mean = jnp.dot(w, sum_x, preferred_element_type=jnp.float32) * inv_m  # (Cout_tile, 1)
    msq = jnp.sum(y * y, axis=-1, keepdims=True) * inv_m     # padded cols of y are 0
    var = jnp.maximum(msq - mean * mean, 0.0)                # guard f32 cancellation

    gamma = gb_ref[:, 0:1]
    beta = gb_ref[:, 1:2]
    scale = jax.lax.rsqrt(var + 1e-5) * gamma                # (Cout_tile, 1)
    shift = beta - mean * scale
    out_ref[...] = y * scale + shift                         # 1 mul + 1 add per element


def add_conv1x1_bn(x33, x41, weight, gamma, beta):
    """x33, x41: (N, Cin, H, W) f32.  weight: (Cout, Cin, 1, 1).  Returns (N, Cout, H, W)."""
    N, Cin, H, W = x33.shape
    Cout = weight.shape[0]
    M = N * H * W
    LANE = 128
    Mp = ((M + LANE - 1) // LANE) * LANE                     # lane-dense padded width

    # NCHW -> channel-major (Cin, M).  Pure reshape for N == 1.
    if N == 1:
        a = x33.reshape(Cin, M)
        b = x41.reshape(Cin, M)
    else:
        a = jnp.transpose(x33, (1, 0, 2, 3)).reshape(Cin, M)
        b = jnp.transpose(x41, (1, 0, 2, 3)).reshape(Cin, M)

    if Mp != M:
        pad = ((0, 0), (0, Mp - M))
        a = jnp.pad(a, pad)
        b = jnp.pad(b, pad)

    w = weight.reshape(Cout, Cin)                            # (Cout, Cin)
    gb = jnp.concatenate([gamma.reshape(Cout, 1),
                          beta.reshape(Cout, 1)], axis=-1)   # (Cout, 2)

    # Small Cout tiling: 2 tiles (96 rows each for Cout=192) -> pipelined
    # output writeback + per-tile weight fetch; parallel split on v7x.
    n_tiles = 2 if (Cout % 16 == 0) else 1
    Ct = Cout // n_tiles

    out_mat = pl.pallas_call(
        functools.partial(add_conv1x1_bn_kernel, true_m=M),
        out_shape=jax.ShapeDtypeStruct((Cout, Mp), jnp.float32),
        grid=(n_tiles,),
        in_specs=[
            pl.BlockSpec((Cin, Mp), lambda i: (0, 0)),       # resident across tiles
            pl.BlockSpec((Cin, Mp), lambda i: (0, 0)),
            pl.BlockSpec((Ct, Cin), lambda i: (i, 0)),
            pl.BlockSpec((Ct, 2), lambda i: (i, 0)),
        ],
        out_specs=pl.BlockSpec((Ct, Mp), lambda i: (i, 0)),
        compiler_params=pltpu.CompilerParams(
            dimension_semantics=("parallel",)),
    )(a, b, w, gb)

    out_mat = out_mat[:, :M]                                 # drop lane padding
    # (Cout, M) -> NCHW.  Pure reshape for N == 1.
    if N == 1:
        return out_mat.reshape(N, Cout, H, W)
    return jnp.transpose(out_mat.reshape(Cout, N, H, W), (1, 0, 2, 3))


def reference(x33, x41, weight, gamma, beta):
    x = x33 + x41
    N, Cin, H, W = x.shape
    Cout = weight.shape[0]
    xm = jnp.transpose(x, (0, 2, 3, 1)).reshape(-1, Cin)
    y = xm @ weight.reshape(Cout, Cin).T
    mean = jnp.mean(y, axis=0, keepdims=True)
    var = jnp.mean((y - mean) ** 2, axis=0, keepdims=True)
    out = (y - mean) / jnp.sqrt(var + 1e-5) * gamma.reshape(1, Cout) + beta.reshape(1, Cout)
    return jnp.transpose(out.reshape(N, H, W, Cout), (0, 3, 1, 2))


if __name__ == "__main__":
    key = jax.random.PRNGKey(0)
    k1, k2, k3 = jax.random.split(key, 3)

    N, Cin, H, W, Cout = 1, 32, 28, 28, 192
    x33 = jax.random.normal(k1, (N, Cin, H, W), dtype=jnp.float32)
    x41 = jax.random.normal(k2, (N, Cin, H, W), dtype=jnp.float32)

    # Conv2d(32, 192, 1, bias=False) weight, deterministic init.
    weight = jax.random.normal(k3, (Cout, Cin, 1, 1), dtype=jnp.float32) * 0.1
    # BatchNorm2d(192) affine params at PyTorch defaults (gamma=1, beta=0).
    gamma = jnp.ones((Cout,), dtype=jnp.float32)
    beta = jnp.zeros((Cout,), dtype=jnp.float32)

    out = add_conv1x1_bn(x33, x41, weight, gamma, beta)
    out = jax.block_until_ready(out)

    ref = reference(x33, x41, weight, gamma, beta)
    assert out.shape == (N, Cout, H, W)
    # bf16 MXU operands (f32 accumulation) give ~3e-3 per-element noise vs the
    # pure-f32 reference; 2e-2 tolerance leaves ample margin.
    assert jnp.allclose(out, ref, rtol=2e-2, atol=2e-2), "mismatch vs reference"

    print("KERNEL_OK")
</pallas_src>

<mosaic_0001>
module attributes {stable_mosaic.version = 11 : i64} {
  func.func @add_conv1x1_bn_kernel(%arg0: i32, %arg1: memref<32x896xf32, #tpu.memory_space<vmem>>, %arg2: memref<32x896xf32, #tpu.memory_space<vmem>>, %arg3: memref<96x32xf32, #tpu.memory_space<vmem>>, %arg4: memref<96x2xf32, #tpu.memory_space<vmem>>, %arg5: memref<96x896xf32, #tpu.memory_space<vmem>>) attributes {dimension_semantics = [#tpu.dimension_semantics<parallel>], iteration_bounds = array<i64: 2>, scalar_prefetch = 0 : i64, scratch_operands = 0 : i64, tpu.core_type = #tpu.core_type<tc>, window_params = [{pipeline_mode = #tpu.pipeline_mode<synchronous>, transform_indices = @transform_0, window_bounds = array<i64: 32, 896>}, {pipeline_mode = #tpu.pipeline_mode<synchronous>, transform_indices = @transform_1, window_bounds = array<i64: 32, 896>}, {transform_indices = @transform_2, window_bounds = array<i64: 96, 32>}, {transform_indices = @transform_3, window_bounds = array<i64: 96, 2>}, {transform_indices = @transform_4, window_bounds = array<i64: 96, 896>}]} {
    %c0 = arith.constant 0 : index
    %c0_0 = arith.constant 0 : index
    %0 = vector.load %arg1[%c0, %c0_0] : memref<32x896xf32, #tpu.memory_space<vmem>>, vector<32x896xf32>
    %c0_1 = arith.constant 0 : index
    %c0_2 = arith.constant 0 : index
    %1 = vector.load %arg2[%c0_1, %c0_2] : memref<32x896xf32, #tpu.memory_space<vmem>>, vector<32x896xf32>
    %2 = arith.addf %0, %1 : vector<32x896xf32>
    %c0_3 = arith.constant 0 : index
    %c0_4 = arith.constant 0 : index
    %3 = vector.load %arg3[%c0_3, %c0_4] : memref<96x32xf32, #tpu.memory_space<vmem>>, vector<96x32xf32>
    %4 = arith.truncf %3 : vector<96x32xf32> to vector<96x32xbf16>
    %5 = arith.truncf %2 : vector<32x896xf32> to vector<32x896xbf16>
    %cst = arith.constant dense<0.000000e+00> : vector<96x896xf32>
    %6 = tpu.matmul %4, %5, %cst {dimension_numbers = #tpu.dot_dimension_numbers<[1], [0], [0], [1], [0, 0, 1, 1], [], []>} : vector<96x32xbf16>, vector<32x896xbf16>, vector<96x896xf32> -> vector<96x896xf32>
    %cst_5 = arith.constant dense<0.000000e+00> : vector<32xf32>
    %7 = vector.multi_reduction <add>, %2, %cst_5 [1] : vector<32x896xf32> to vector<32xf32>
    %8 = vector.shape_cast %7 : vector<32xf32> to vector<32x1xf32>
    %cst_6 = arith.constant dense<0.000000e+00> : vector<96x1xf32>
    %9 = tpu.matmul %3, %8, %cst_6 {dimension_numbers = #tpu.dot_dimension_numbers<[1], [0], [0], [1], [0, 0, 1, 1], [], []>} : vector<96x32xf32>, vector<32x1xf32>, vector<96x1xf32> -> vector<96x1xf32>
    %cst_7 = arith.constant 0.00127551018 : f32
    %10 = vector.broadcast %cst_7 : f32 to vector<96x1xf32>
    %11 = arith.mulf %9, %10 : vector<96x1xf32>
    %12 = arith.mulf %6, %6 : vector<96x896xf32>
    %cst_8 = arith.constant dense<0.000000e+00> : vector<96xf32>
    %13 = vector.multi_reduction <add>, %12, %cst_8 [1] : vector<96x896xf32> to vector<96xf32>
    %14 = vector.shape_cast %13 : vector<96xf32> to vector<96x1xf32>
    %cst_9 = arith.constant 0.00127551018 : f32
    %15 = vector.broadcast %cst_9 : f32 to vector<96x1xf32>
    %16 = arith.mulf %14, %15 : vector<96x1xf32>
    %17 = arith.mulf %11, %11 : vector<96x1xf32>
    %18 = arith.subf %16, %17 : vector<96x1xf32>
    %cst_10 = arith.constant 0.000000e+00 : f32
    %19 = vector.broadcast %cst_10 : f32 to vector<96x1xf32>
    %20 = arith.maximumf %18, %19 : vector<96x1xf32>
    %c0_11 = arith.constant 0 : index
    %c0_12 = arith.constant 0 : index
    %21 = vector.load %arg4[%c0_11, %c0_12] : memref<96x2xf32, #tpu.memory_space<vmem>>, vector<96x1xf32>
    %c0_13 = arith.constant 0 : index
    %c1 = arith.constant 1 : index
    %22 = vector.load %arg4[%c0_13, %c1] : memref<96x2xf32, #tpu.memory_space<vmem>>, vector<96x1xf32>
    %cst_14 = arith.constant 9.99999974E-6 : f32
    %23 = vector.broadcast %cst_14 : f32 to vector<96x1xf32>
    %24 = arith.addf %20, %23 : vector<96x1xf32>
    %25 = math.rsqrt %24 : vector<96x1xf32>
    %26 = arith.mulf %25, %21 : vector<96x1xf32>
    %27 = arith.mulf %11, %26 : vector<96x1xf32>
    %28 = arith.subf %22, %27 : vector<96x1xf32>
    %29 = vector.broadcast %26 : vector<96x1xf32> to vector<96x896xf32>
    %30 = arith.mulf %6, %29 : vector<96x896xf32>
    %31 = vector.broadcast %28 : vector<96x1xf32> to vector<96x896xf32>
    %32 = arith.addf %30, %31 : vector<96x896xf32>
    %c0_15 = arith.constant 0 : index
    %c0_16 = arith.constant 0 : index
    %33 = vector.load %arg5[%c0_15, %c0_16] : memref<96x896xf32, #tpu.memory_space<vmem>>, vector<96x896xf32>
    tpu.vector_store %arg5[%c0_15, %c0_16], %32 {strides = array<i32>} : memref<96x896xf32, #tpu.memory_space<vmem>>, vector<96x896xf32>,
    return
  }
  func.func @transform_0(%arg0: i32) -> (i32, i32) {
    %c0_i32 = arith.constant 0 : i32
    %c0_i32_0 = arith.constant 0 : i32
    %c0_i32_1 = arith.constant 0 : i32
    return %c0_i32, %c0_i32_0 : i32, i32
  }
  func.func @transform_1(%arg0: i32) -> (i32, i32) {
    %c0_i32 = arith.constant 0 : i32
    %c0_i32_0 = arith.constant 0 : i32
    %c0_i32_1 = arith.constant 0 : i32
    return %c0_i32, %c0_i32_0 : i32, i32
  }
  func.func @transform_2(%arg0: i32) -> (i32, i32) {
    %c0_i32 = arith.constant 0 : i32
    %c0_i32_0 = arith.constant 0 : i32
    return %arg0, %c0_i32 : i32, i32
  }
  func.func @transform_3(%arg0: i32) -> (i32, i32) {
    %c0_i32 = arith.constant 0 : i32
    %c0_i32_0 = arith.constant 0 : i32
    return %arg0, %c0_i32 : i32, i32
  }
  func.func @transform_4(%arg0: i32) -> (i32, i32) {
    %c0_i32 = arith.constant 0 : i32
    %c0_i32_0 = arith.constant 0 : i32
    return %arg0, %c0_i32 : i32, i32
  }
}

</mosaic_0001>

<bundles_post_ra>
// kernel: tpu_custom_call.1
= control target key start
LH: loop header
LB: loop body
LE: loop exit
PB: predicated region body
PF: predicated region fallthrough
CT: control target
= control target key end

     0   :  { %9 = vsyncpa [#allocation3], 0  ;;  %s3187_s0 = inlined_call_operand.vmem [shape: f32[32,896], index: 0, kind: input, shape index: {}]   ;;  %s3188_s1 = inlined_call_operand.vmem [shape: f32[32,896], index: 1, kind: input, shape index: {}]   ;;  %s3189_s2 = inlined_call_operand.vmem [shape: f32[192,32], index: 2, kind: input, shape index: {}]   ;;  %s3190_s3 = inlined_call_operand.vmem [shape: f32[192,2], index: 3, kind: input, shape index: {}]   ;;  %s3191_s4 = inlined_call_operand.hbm [shape: f32[192,896], index: 4, kind: output, shape index: {}]  }
   0x1   :  { %11 = vsyncpa [#allocation3 + $0x1], 0  ;;  %s2020_s15 = smov 0   ;;  %s2022_s16 = smov 0  }
   0x2   :  { %s2024_s17 = smov 0   ;;  %s2026_s18 = smov 0  }
   0x3 LB: > { %s2041_s19 = sadd.s32 4294967295, %s1987_s18   ;;  %s1731_s20 = sadd.s32 4294967294, %s1987_s18   ;;  %s1987_s18 = sphi %s2026_s18, %s3366_s18   ;;  %s1983_s17 = sphi %s2024_s17, %s3365_s17   ;;  %s1979_s16 = sphi %s2022_s16, %s3364_s16   ;;  %s1975_s15 = sphi %s2020_s15, %s3363_s15  }
   0x4   : > { %s2045_s21 = sadd.s32 1, %s1987_s18   ;;  %s118_s22 = sadd.s32 1, %s1983_s17 }
   0x5   : > { %s115_s23 = ssub.s32 %s1987_s18, %s2045_s21  ;;  %p128_p0 = scmp.ne.s32.totalorder %s1983_s17, %s1979_s16 }
   0x6   : > { %p116_p1 = scmp.eq.s32.totalorder %s115_s23, 0  ;;  %p129_p2 = scmp.eq.s32.totalorder %s2041_s19, 1 }
   0x7   : > { %p134_p3 = scmp.ne.s32.totalorder %s1979_s16, %s1975_s15  ;;  %p135_p4 = scmp.eq.s32.totalorder %s1731_s20, 1 }
   0x8   : > { %s2056_s24 = scalar_select %p116_p1, %s1983_s17, %s118_s22  }
   0x9   : > { %p2058_p5 = por %p129_p2, %p128_p0  ;;  %p2062_p6 = por %p135_p4, %p134_p3 }
   0xa   : > { %p1734_p7 = scmp.ge.s32.totalorder %s1987_s18, 1  ;;  %p177_p8 = scmp.lt.s32.totalorder %s1987_s18, 3 }
   0xc   : > { %p178_p9 = pnand %p1734_p7, %p177_p8 }
   0xe   : > { %181 = sbr.rel (%p178_p9) target bundleno = 780 (0x30c), region = 36 }
  0x15   : > { %v223_v0 = vld [vmem:[%s3187_s0 + $0x8] sm:$0xff]  ;;  %v230_v1 = vld [vmem:[%s3187_s0 + $0x40] sm:$0xff]  ;;  %s208_s7 = smul.u32 12, %s2041_s19  ;;  %v229_v6 = vld [vmem:[%s3187_s0 + $0x38] sm:$0xff]  ;;  %v1989_v7 = vmov 0   ;;  %vm338_vm0 = vcmask 261120  }
  0x16   : > { %v251_v2 = vld [vmem:[%s3188_s1 + $0x8] sm:$0xff]  ;;  %v258_v3 = vld [vmem:[%s3188_s1 + $0x40] sm:$0xff]  ;;  %389 = vmatprep.mubr.bf16.mxu0 %v1989_v7  ;;  %482 = vmatprep.mubr.bf16.mxu1 %v1989_v7  ;;  %v257_v10 = vld [vmem:[%s3188_s1 + $0x38] sm:$0xff]  ;;  %s1858_s30 = smul.u32 10752, %s2041_s19  ;;  %s1992_s11 = smov [#allocation2]  }
  0x17   : > { %v279_v4 = vadd.f32 %v251_v2, %v223_v0  ;;  %v222_v5 = vld [vmem:[%s3187_s0] sm:$0xff]  ;;  %v286_v8 = vadd.f32 %v258_v3, %v230_v1  ;;  %v225_v11 = vld [vmem:[%s3187_s0 + $0x18] sm:$0xff]  ;;  %p2098_p10 = scmp.lt.s32.totalorder %s208_s7, 23  ;;  %1897 = vset.pattern.permute.xlu0 %v1989_v7  ;;  %1898 = vset.pattern.permute.xlu1 %v1989_v7  ;;  %v285_v13 = vadd.f32 %v257_v10, %v229_v6  ;;  %v232_v14 = vld [vmem:[%s3187_s0 + $0x50] sm:$0xff]  ;;  %s1929_s12 = sshll.u32 %s1992_s11, 4  ;;  %s1930_s12 = int_to_ptr.vmem [resolvable:$false] %s1929_s12 }
  0x18   : > { %v250_v9 = vld [vmem:[%s3188_s1] sm:$0xff]  ;;  %v253_v15 = vld [vmem:[%s3188_s1 + $0x18] sm:$0xff]  ;;  %v260_v16 = vld [vmem:[%s3188_s1 + $0x50] sm:$0xff]  ;;  %s3130_s8 = scalar_lea.hbm %s3191_s4, %s1858_s30  ;;  %s1931_s14 = scalar_lea.vmem %s1930_s12, 21504 }
  0x19   : > { %v278_v12 = vadd.f32 %v250_v9, %v222_v5  ;;  %v325_v17 = vpack.c.bf16 %v286_v8, %v279_v4  ;;  %v281_v18 = vadd.f32 %v253_v15, %v225_v11  ;;  %v2113_v19 = vadd.f32 %v260_v16, %v232_v14  ;;  %v237_v20 = vld [vmem:[%s3187_s0 + $0x78] sm:$0xff]  ;;  %v244_v21 = vld [vmem:[%s3187_s0 + $0xb0] sm:$0xff]  ;;  %s3368_s7 = smov (!%p2098_p10, %s208_s7), 23  ;;  %v231_v29 = vld [vmem:[%s3187_s0 + $0x48] sm:$0xff] }
  0x1a   : > { %v265_v22 = vld [vmem:[%s3188_s1 + $0x78] sm:$0xff]  ;;  %v725_v25 = vadd.f32 %v286_v8, %v285_v13  ;;  %v272_v26 = vld [vmem:[%s3188_s1 + $0xb0] sm:$0xff]  ;;  %v259_v33 = vld [vmem:[%s3188_s1 + $0x48] sm:$0xff]  ;;  %s1735_s13 = sshll.u32 %s3368_s7, 3  ;;  %s1990_s7 = smov 1  }
  0x1b   : > { %v324_v23 = vpack.c.bf16 %v285_v13, %v278_v12  ;;  %v717_v24 = vadd.f32 %v279_v4, %v278_v12  ;;  %v293_v27 = vadd.f32 %v265_v22, %v237_v20  ;;  %v224_v28 = vld [vmem:[%s3187_s0 + $0x10] sm:$0xff]  ;;  %357 = vmatprep.subr.bf16.mxu0 %v325_v17  ;;  %v327_v30 = vpack.c.bf16 %v2113_v19, %v281_v18  ;;  %v243_v37 = vld [vmem:[%s3187_s0 + $0xa8] sm:$0xff]  ;;  %s2162_s6 = scalar_lea.vmem %s3189_s2, %s1735_s13  ;;  %v246_v44 = vld [vmem:[%s3187_s0 + $0xc0] sm:$0xff]  ;;  %s2760_s23 = scalar_lea.vmem %s3190_s3, %s1735_s13 }
  0x1c   : > { %v300_v31 = vadd.f32 %v272_v26, %v244_v21  ;;  %v252_v32 = vld [vmem:[%s3188_s1 + $0x10] sm:$0xff]  ;;  %v287_v36 = vadd.f32 %v259_v33, %v231_v29  ;;  %v271_v39 = vld [vmem:[%s3188_s1 + $0xa8] sm:$0xff]  ;;  %v274_v49 = vld [vmem:[%s3188_s1 + $0xc0] sm:$0xff]  ;;  %s205_s13 = sand.u32 1, %s1979_s16  }
  0x1d   : > { %v236_v34 = vld [vmem:[%s3187_s0 + $0x70] sm:$0xff]  ;;  %358 = vmatpush1.bf16.msra.mxu0 %v324_v23  ;;  %v280_v35 = vadd.f32 %v252_v32, %v224_v28  ;;  %450 = vmatprep.subr.bf16.mxu1 %v327_v30  ;;  %v299_v42 = vadd.f32 %v271_v39, %v243_v37  ;;  %v239_v43 = vld [vmem:[%s3187_s0 + $0x88] sm:$0xff]  ;;  %v2177_v51 = vld [vmem:[%s2162_s6] sm:$0xff]  ;;  %v302_v56 = vadd.f32 %v274_v49, %v246_v44  ;;  %s1850_s27 = smul.u32 672, %s205_s13  ;;  %s3146_s9 = scalar_lea.sflag [#allocation3], %s205_s13 }
  0x1e   : > { %v264_v38 = vld [vmem:[%s3188_s1 + $0x70] sm:$0xff]  ;;  %v332_v40 = vpack.c.bf16 %v300_v31, %v293_v27  ;;  %v267_v45 = vld [vmem:[%s3188_s1 + $0x88] sm:$0xff]  ;;  %v726_v48 = vadd.f32 %v725_v25, %v287_v36  ;;  %v238_v57 = vld [vmem:[%s3187_s0 + $0x80] sm:$0xff] }
  0x1f   : > { %v292_v41 = vadd.f32 %v264_v38, %v236_v34  ;;  %v326_v46 = vpack.c.bf16 %v287_v36, %v280_v35  ;;  %v718_v47 = vadd.f32 %v717_v24, %v280_v35  ;;  %v295_v50 = vadd.f32 %v267_v45, %v239_v43  ;;  %v2180_v52 = vld [vmem:[%s2162_s6 + $0x8] sm:$0xff]  ;;  %v245_v58 = vld [vmem:[%s3187_s0 + $0xb8] sm:$0xff]  ;;  %v266_v59 = vld [vmem:[%s3188_s1 + $0x80] sm:$0xff]  ;;  %s2909_s28 = scalar_lea.vmem [#allocation2], %s1850_s27 }
  0x20   : > { %359 = vmatprep.subr.bf16.mxu0 %v332_v40  ;;  %v741_v55 = vadd.f32 %v300_v31, %v299_v42  ;;  %v2193_v60 = vpack.c.bf16 %v2180_v52, %v2177_v51  ;;  %v273_v61 = vld [vmem:[%s3188_s1 + $0xb8] sm:$0xff]  ;;  %v294_v62 = vadd.f32 %v266_v59, %v238_v57  ;;  %v227_v63 = vld [vmem:[%s3187_s0 + $0x28] sm:$0xff]  ;;  %v234_v0 = vld [vmem:[%s3187_s0 + $0x60] sm:$0xff]  ;;  %v727_v13 = vadd.f32 %v726_v48, %v2113_v19  ;;  %s1657_s5 = sshll.u32 %s2909_s28, 4  ;;  %s3132_s5 = int_to_ptr.vmem [resolvable:$true] %s1657_s5 }
  0x21   : > { %v331_v53 = vpack.c.bf16 %v299_v42, %v292_v41  ;;  %v733_v54 = vadd.f32 %v293_v27, %v292_v41  ;;  %451 = vmatpush1.bf16.msra.mxu1 %v326_v46  ;;  %v334_v1 = vpack.c.bf16 %v302_v56, %v295_v50  ;;  %v301_v2 = vadd.f32 %v273_v61, %v245_v58  ;;  %v255_v3 = vld [vmem:[%s3188_s1 + $0x28] sm:$0xff]  ;;  %v262_v4 = vld [vmem:[%s3188_s1 + $0x60] sm:$0xff]  ;;  %v233_v10 = vld [vmem:[%s3187_s0 + $0x58] sm:$0xff]  ;;  %s1925_s10 = scalar_lea.vmem %s3132_s5, 10752  ;;  %p1932_p0 = scmp.lt.s32.totalorder %s3132_s5, %s1930_s12 }
  0x22   : > { %v226_v5 = vld [vmem:[%s3187_s0 + $0x20] sm:$0xff]  ;;  %v719_v6 = vadd.f32 %v718_v47, %v281_v18  ;;  %v283_v8 = vadd.f32 %v255_v3, %v227_v63  ;;  %v290_v9 = vadd.f32 %v262_v4, %v234_v0  ;;  %v261_v12 = vld [vmem:[%s3188_s1 + $0x58] sm:$0xff]  ;;  %v2224_v20 = vld [vmem:[%s2162_s6 + $0x10] sm:$0xff]  ;;  %p1926_p11 = scmp.ne.s32.totalorder %s3132_s5, %s1925_s10  ;;  %p1933_p1 = scmp.lt.s32.totalorder %s1931_s14, %s1925_s10 }
  0x23   : > { %360 = vmatpush1.bf16.msra.mxu0 %v331_v53  ;;  %v254_v11 = vld [vmem:[%s3188_s1 + $0x20] sm:$0xff]  ;;  %v734_v14 = vadd.f32 %v733_v54, %v294_v62  ;;  %452 = vmatprep.subr.bf16.mxu1 %v334_v1  ;;  %v333_v15 = vpack.c.bf16 %v301_v2, %v294_v62  ;;  %v742_v16 = vadd.f32 %v741_v55, %v301_v2  ;;  %v2229_v22 = vld [vmem:[%s2162_s6 + $0x18] sm:$0xff]  ;;  %v228_v23 = vld [vmem:[%s3187_s0 + $0x30] sm:$0xff] }
  0x24   : > { %v282_v17 = vadd.f32 %v254_v11, %v226_v5  ;;  %v289_v18 = vadd.f32 %v261_v12, %v233_v10  ;;  %v329_v21 = vpack.c.bf16 %v290_v9, %v283_v8  ;;  %v235_v19 = vld [vmem:[%s3187_s0 + $0x68] sm:$0xff]  ;;  %v256_v25 = vld [vmem:[%s3188_s1 + $0x30] sm:$0xff]  ;;  %v241_v30 = vld [vmem:[%s3187_s0 + $0x98] sm:$0xff]  ;;  %v2252_v33 = vpack.c.bf16 %v2229_v22, %v2224_v20  ;;  %p1927_p12 = pnand %p1926_p11, %p2058_p5  ;;  %p1934_p2 = por %p1933_p1, %p1932_p0 }
  0x25   : > { %453 = vmatpush1.bf16.msra.mxu1 %v333_v15  ;;  %v263_v26 = vld [vmem:[%s3188_s1 + $0x68] sm:$0xff]  ;;  %v284_v28 = vadd.f32 %v256_v25, %v228_v23  ;;  %v248_v31 = vld [vmem:[%s3187_s0 + $0xd0] sm:$0xff]  ;;  %v269_v34 = vld [vmem:[%s3188_s1 + $0x98] sm:$0xff]  ;;  %v735_v38 = vadd.f32 %v734_v14, %v295_v50  ;;  %v743_v39 = vadd.f32 %v742_v16, %v302_v56 }
  0x26   : > { %1737 = vmatmul.mubr.msk.bf16.vlgmr.msra.gmra.mrb[0].mxu0 %vm338_vm0, %v2193_v60  ;;  %v328_v24 = vpack.c.bf16 %v289_v18, %v282_v17  ;;  %v720_v27 = vadd.f32 %v719_v6, %v282_v17  ;;  %543 = vmatprep.subr.bf16.mxu0 %v329_v21  ;;  %v291_v29 = vadd.f32 %v263_v26, %v235_v19  ;;  %v276_v35 = vld [vmem:[%s3188_s1 + $0xd0] sm:$0xff]  ;;  %v247_v43 = vld [vmem:[%s3187_s0 + $0xc8] sm:$0xff]  ;;  %v242_v53 = vld [vmem:[%s3187_s0 + $0xa0] sm:$0xff]  ;;  %p1928_p13 = pneg %p1927_p12 }
  0x27   : > { %399 = vmatprep.mubr.bf16.mxu0 %v1989_v7  ;;  %v728_v32 = vadd.f32 %v727_v13, %v289_v18  ;;  %v240_v36 = vld [vmem:[%s3187_s0 + $0x90] sm:$0xff]  ;;  %v297_v41 = vadd.f32 %v269_v34, %v241_v30  ;;  %v304_v42 = vadd.f32 %v276_v35, %v248_v31  ;;  %v275_v45 = vld [vmem:[%s3188_s1 + $0xc8] sm:$0xff]  ;;  %v270_v54 = vld [vmem:[%s3188_s1 + $0xa0] sm:$0xff] }
  0x28   : > { %544 = vmatpush1.bf16.msra.mxu0 %v328_v24  ;;  %v721_v37 = vadd.f32 %v720_v27, %v283_v8  ;;  %1743 = vmatmul.mubr.msk.bf16.vlgmr.msra.gmra.mrb[0].mxu1 %vm338_vm0, %v2193_v60  ;;  %v330_v40 = vpack.c.bf16 %v291_v29, %v284_v28  ;;  %v268_v44 = vld [vmem:[%s3188_s1 + $0x90] sm:$0xff]  ;;  %v303_v48 = vadd.f32 %v275_v45, %v247_v43  ;;  %v249_v58 = vld [vmem:[%s3187_s0 + $0xd8] sm:$0xff]  ;;  %v2291_v0 = vld [vmem:[%s2162_s6 + $0x20] sm:$0xff]  ;;  %p1935_p3 = pnand %p1934_p2, %p1928_p13 }
  0x29   : > { %v729_v46 = vadd.f32 %v728_v32, %v290_v9  ;;  %492 = vmatprep.mubr.bf16.mxu1 %v1989_v7  ;;  %v296_v47 = vadd.f32 %v268_v44, %v240_v36  ;;  %v336_v50 = vpack.c.bf16 %v304_v42, %v297_v41  ;;  %v298_v57 = vadd.f32 %v270_v54, %v242_v53  ;;  %v277_v59 = vld [vmem:[%s3188_s1 + $0xd8] sm:$0xff]  ;;  %v2294_v1 = vld [vmem:[%s2162_s6 + $0x28] sm:$0xff]  ;;  %v312_v9 = vld [vmem:[%s2162_s6 + $0x30] sm:$0xff] }
  0x2a   : > { %v722_v49 = vadd.f32 %v721_v37, %v284_v28  ;;  %1800 = vmatprep.subr.bf16.mxu1 %v330_v40  ;;  %v305_v62 = vadd.f32 %v277_v59, %v249_v58  ;;  %v744_v63 = vadd.f32 %v743_v39, %v303_v48  ;;  %v320_v5 = vpack.c.bf16 %v2294_v1, %v2291_v0  ;;  %v313_v10 = vld [vmem:[%s2162_s6 + $0x38] sm:$0xff]  ;;  %v314_v12 = vld [vmem:[%s2162_s6 + $0x40] sm:$0xff]  ;;  %v315_v13 = vld [vmem:[%s2162_s6 + $0x48] sm:$0xff] }
  0x2b   : > { %1801 = vmatpush3.bf16.msra.mxu1 %v330_v40  ;;  %v335_v55 = vpack.c.bf16 %v303_v48, %v296_v47  ;;  %v730_v56 = vadd.f32 %v729_v46, %v291_v29  ;;  %545 = vmatprep.subr.bf16.mxu0 %v336_v50  ;;  %v736_v61 = vadd.f32 %v735_v38, %v296_v47  ;;  %v316_v15 = vld [vmem:[%s2162_s6 + $0x50] sm:$0xff]  ;;  %v317_v16 = vld [vmem:[%s2162_s6 + $0x58] sm:$0xff] }
  0x2c   : > { %723 = vadd.xlane.f32.xlu0 %v722_v49  ;;  %v337_v3 = vpack.c.bf16 %v305_v62, %v298_v57  ;;  %v745_v4 = vadd.f32 %v744_v63, %v304_v42  ;;  %v321_v11 = vpack.c.bf16 %v313_v10, %v312_v9  ;;  %v322_v14 = vpack.c.bf16 %v315_v13, %v314_v12 }
  0x2d   : > { %546 = vmatpush1.bf16.msra.mxu0 %v335_v55  ;;  %v737_v2 = vadd.f32 %v736_v61, %v297_v41  ;;  %v323_v17 = vpack.c.bf16 %v317_v16, %v316_v15 }
  0x2e   : > { %1738 = vmatmul.mubr.msk.bf16.gmra.mrb[4].mxu0 %vm338_vm0, %v2252_v33  ;;  %1802 = vmatprep.subr.bf16.mxu1 %v337_v3  ;;  %v746_v8 = vadd.f32 %v745_v4, %v305_v62 }
  0x2f   : > { %409 = vmatprep.mubr.bf16.mxu0 %v1989_v7  ;;  %v738_v6 = vadd.f32 %v737_v2, %v298_v57  ;;  %1803 = vmatpush3.bf16.msra.mxu1 %v337_v3 }
  0x30   : > { %731 = vadd.xlane.f32.xlu0 %v730_v56  ;;  %1744 = vmatmul.mubr.msk.bf16.gmra.mrb[4].mxu1 %vm338_vm0, %v2252_v33 }
  0x31   : > { %502 = vmatprep.mubr.bf16.mxu1 %v1989_v7  ;;  %739 = vadd.xlane.f32.xlu1 %v738_v6 }
  0x35   : > { %747 = vadd.xlane.f32.xlu1 %v746_v8 }
  0x36   : > { %1739 = vmatmul.mubr.msk.bf16.gmra.mrb[8].mxu0 %vm338_vm0, %v320_v5 }
  0x37   : > { %419 = vmatprep.mubr.bf16.mxu0 %v1989_v7 }
  0x38   : > { %1745 = vmatmul.mubr.msk.bf16.gmra.mrb[8].mxu1 %vm338_vm0, %v320_v5 }
  0x39   : > { %512 = vmatprep.mubr.bf16.mxu1 %v1989_v7 }
  0x3e   : > { %1740 = vmatmul.mubr.msk.bf16.gmra.mrb[12].mxu0 %vm338_vm0, %v321_v11 }
  0x3f   : > { %429 = vmatprep.mubr.bf16.mxu0 %v1989_v7 }
  0x40   : > { %1746 = vmatmul.mubr.msk.bf16.gmra.mrb[12].mxu1 %vm338_vm0, %v321_v11 }
  0x41   : > { %522 = vmatprep.mubr.bf16.mxu1 %v1989_v7 }
  0x46   : > { %1741 = vmatmul.mubr.msk.bf16.gmra.mrb[16].mxu0 %vm338_vm0, %v322_v14 }
  0x47   : > { %439 = vmatprep.mubr.bf16.mxu0 %v1989_v7 }
  0x48   : > { %1747 = vmatmul.mubr.msk.bf16.gmra.mrb[16].mxu1 %vm338_vm0, %v322_v14 }
  0x49   : > { %532 = vmatprep.mubr.bf16.mxu1 %v1989_v7 }
  0x4e   : > { %1742 = vmatmul.mubr.msk.bf16.gmra.mrb[20].mxu0 %vm338_vm0, %v323_v17 }
  0x4f   : > { %575 = vmatprep.mubr.bf16.mxu0 %v1989_v7 }
  0x50   : > { %1748 = vmatmul.mubr.msk.bf16.gmra.mrb[20].mxu1 %vm338_vm0, %v323_v17 }
  0x51   : > { %1804 = vmatprep.mubr.msk.bf16.mxu1 %vm338_vm0, %v2193_v60 }
  0x56   : > { %1749 = vmatmul.mubr.msk.bf16.vlgmr.msra.gmra.mrb[24].mxu0 %vm338_vm0, %v2193_v60 }
  0x57   : > { %585 = vmatprep.mubr.bf16.mxu0 %v1989_v7 }
  0x58   : > { %1805 = vmatmul.mubr.msk.bf16.vlgmr.msra.gmra.mrb[24].mxu1 %vm338_vm0, %v2252_v33 }
  0x59   : > { %1808 = vmatprep.mubr.msk.bf16.mxu1 %vm338_vm0, %v320_v5 }
  0x5e   : > { %1750 = vmatmul.mubr.msk.bf16.gmra.mrb[28].mxu0 %vm338_vm0, %v2252_v33 }
  0x5f   : > { %595 = vmatprep.mubr.bf16.mxu0 %v1989_v7 }
  0x60   : > { %1809 = vmatmul.mubr.msk.bf16.gmra.mrb[28].mxu1 %vm338_vm0, %v321_v11 }
  0x61   : > { %1812 = vmatprep.mubr.msk.bf16.mxu1 %vm338_vm0, %v322_v14 }
  0x66   : > { %1751 = vmatmul.mubr.msk.bf16.gmra.mrb[32].mxu0 %vm338_vm0, %v320_v5 }
  0x67   : > { %605 = vmatprep.mubr.bf16.mxu0 %v1989_v7 }
  0x68   : > { %1813 = vmatmul.mubr.msk.bf16.gmra.mrb[32].mxu1 %vm338_vm0, %v323_v17 }
  0x69   : > { %1824 = vmatprep.mubr.msk.f32.mxu1 %vm338_vm0, %v2177_v51 }
  0x6e   : > { %1752 = vmatmul.mubr.msk.bf16.gmra.mrb[36].mxu0 %vm338_vm0, %v321_v11 }
  0x6f   : > { %615 = vmatprep.mubr.bf16.mxu0 %v1989_v7 }
  0x76   : > { %1753 = vmatmul.mubr.msk.bf16.gmra.mrb[40].mxu0 %vm338_vm0, %v322_v14 }
  0x77   : > { %625 = vmatprep.mubr.bf16.mxu0 %v1989_v7 }
  0x7e   : > { %1754 = vmatmul.mubr.msk.bf16.gmra.mrb[44].mxu0 %vm338_vm0, %v323_v17 }
  0xb9   : > { %v724_v60 = vpop.xlane.xlu0 %723 }
  0xbd   : > { %v732_v18 = vpop.xlane.xlu0 %731 }
  0xbe   : > { %v1842_v21 = vpack.c.bf16 %v732_v18, %v724_v60  ;;  %v740_v23 = vpop.xlane.xlu1 %739 }
  0xc0   : > { %1843 = vmatprep.subr.bf16.mxu1 %v1842_v21 }
  0xc1   : > { %1845 = vmatpush3.bf16.msra.mxu1 %v1842_v21 }
  0xc2   : > { %v748_v19 = vpop.xlane.xlu1 %747 }
  0xc3   : > { %v1846_v24 = vpack.c.bf16 %v748_v19, %v740_v23 }
  0xc5   : > { %1847 = vmatprep.subr.bf16.mxu1 %v1846_v24 }
  0xc6   : > { %1849 = vmatpush3.bf16.msra.mxu1 %v1846_v24 }
  0xc9   : > { %1825 = vmatmul.mubr.msk.f32.vlgmr.msra.gmra.mrb[36].mxu1 %vm338_vm0, %v2180_v52 }
  0xca   : > { %1827 = vmatprep.mubr.msk.f32.mxu1 %vm338_vm0, %v2224_v20 }
  0xcd   : > { %1828 = vmatmul.mubr.msk.f32.gmra.mrb[38].mxu1 %vm338_vm0, %v2229_v22 }
  0xce   : > { %1830 = vmatprep.mubr.msk.f32.mxu1 %vm338_vm0, %v2291_v0 }
  0xd1   : > { %1831 = vmatmul.mubr.msk.f32.gmra.mrb[40].mxu1 %vm338_vm0, %v2294_v1 }
  0xd2   : > { %1833 = vmatprep.mubr.msk.f32.mxu1 %vm338_vm0, %v312_v9 }
  0xd5   : > { %1834 = vmatmul.mubr.msk.f32.gmra.mrb[42].mxu1 %vm338_vm0, %v313_v10 }
  0xd6   : > { %1836 = vmatprep.mubr.msk.f32.mxu1 %vm338_vm0, %v314_v12 }
  0xd9   : > { %1837 = vmatmul.mubr.msk.f32.gmra.mrb[44].mxu1 %vm338_vm0, %v315_v13 }
  0xda   : > { %1839 = vmatprep.mubr.msk.f32.mxu1 %vm338_vm0, %v316_v15 }
  0xdd   : > { %1840 = vmatmul.mubr.msk.f32.gmra.mrb[46].mxu1 %vm338_vm0, %v317_v16 }
  0xf9   : > { %v2361_v7 = vpop.f32.mrb[0].mxu0 }
  0xfa   : > { %v922_v51 = vmul.f32 %v2361_v7, %v2361_v7  ;;  %v2365_v52 = vpop.f32.mrb[1].mxu0 }
  0xfb   : > { %v923_v20 = vmul.f32 %v2365_v52, %v2365_v52  ;;  %v2369_v22 = vpop.f32.mrb[2].mxu0  ;;  %v2377_v29 = vpop.f32.mrb[0].mxu1 }
  0xfc   : > { %v929_v25 = vmul.f32 %v2369_v22, %v2369_v22  ;;  %v2373_v26 = vpop.f32.mrb[3].mxu0  ;;  %v924_v30 = vmul.f32 %v2377_v29, %v2377_v29  ;;  %v2381_v31 = vpop.f32.mrb[1].mxu1 }
  0xfd   : > { %v1006_v27 = vadd.f32 %v923_v20, %v922_v51  ;;  %v930_v28 = vmul.f32 %v2373_v26, %v2373_v26  ;;  %v925_v33 = vmul.f32 %v2381_v31, %v2381_v31  ;;  %v2385_v34 = vpop.f32.mrb[2].mxu1 }
  0xfe   : > { %v931_v36 = vmul.f32 %v2385_v34, %v2385_v34  ;;  %v2389_v37 = vpop.f32.mrb[3].mxu1 }
  0xff   : > { %v1014_v32 = vadd.f32 %v930_v28, %v929_v25  ;;  %v1007_v35 = vadd.f32 %v1006_v27, %v924_v30  ;;  %v932_v38 = vmul.f32 %v2389_v37, %v2389_v37 }
 0x101   : > { %v2393_v39 = vpop.f32.mrb[4].mxu0  ;;  %v2395_v40 = vadd.f32 %v1007_v35, %v925_v33  ;;  %v1015_v41 = vadd.f32 %v1014_v32, %v931_v36 }
 0x102   : > { %v936_v42 = vmul.f32 %v2393_v39, %v2393_v39  ;;  %v2399_v43 = vpop.f32.mrb[5].mxu0 }
 0x103   : > { %v937_v44 = vmul.f32 %v2399_v43, %v2399_v43  ;;  %v2403_v45 = vpop.f32.mrb[6].mxu0  ;;  %v2405_v46 = vadd.f32 %v1015_v41, %v932_v38  ;;  %v2413_v53 = vpop.f32.mrb[4].mxu1 }
 0x104   : > { %v943_v47 = vmul.f32 %v2403_v45, %v2403_v45  ;;  %v2409_v48 = vpop.f32.mrb[7].mxu0  ;;  %v938_v54 = vmul.f32 %v2413_v53, %v2413_v53  ;;  %v2417_v55 = vpop.f32.mrb[5].mxu1 }
 0x105   : > { %v1022_v49 = vadd.f32 %v937_v44, %v936_v42  ;;  %v944_v50 = vmul.f32 %v2409_v48, %v2409_v48  ;;  %v939_v57 = vmul.f32 %v2417_v55, %v2417_v55  ;;  %v2421_v58 = vpop.f32.mrb[6].mxu1 }
 0x106   : > { %v945_v61 = vmul.f32 %v2421_v58, %v2421_v58  ;;  %v2425_v62 = vpop.f32.mrb[7].mxu1 }
 0x107   : > { %v1030_v56 = vadd.f32 %v944_v50, %v943_v47  ;;  %v1023_v59 = vadd.f32 %v1022_v49, %v938_v54  ;;  %v946_v63 = vmul.f32 %v2425_v62, %v2425_v62 }
 0x109   : > { %v2429_v0 = vpop.f32.mrb[8].mxu0  ;;  %v2431_v1 = vadd.f32 %v1023_v59, %v939_v57  ;;  %v1031_v2 = vadd.f32 %v1030_v56, %v945_v61 }
 0x10a   : > { %3251 = vst [vmem:[#allocation5_spill] sm:$0xff] %v2429_v0  ;;  %v950_v3 = vmul.f32 %v2429_v0, %v2429_v0  ;;  %v2435_v4 = vpop.f32.mrb[9].mxu0 }
 0x10b   : > { %3252 = vst [vmem:[#allocation6_spill] sm:$0xff] %v2435_v4  ;;  %v951_v5 = vmul.f32 %v2435_v4, %v2435_v4  ;;  %v2439_v6 = vpop.f32.mrb[10].mxu0  ;;  %v2441_v8 = vadd.f32 %v1031_v2, %v946_v63  ;;  %v2449_v13 = vpop.f32.mrb[8].mxu1 }
 0x10c   : > { %3253 = vst [vmem:[#allocation7_spill] sm:$0xff] %v2439_v6  ;;  %v957_v9 = vmul.f32 %v2439_v6, %v2439_v6  ;;  %v2445_v10 = vpop.f32.mrb[11].mxu0  ;;  %3255 = vst [vmem:[#allocation9_spill] sm:$0xff] %v2449_v13  ;;  %v952_v14 = vmul.f32 %v2449_v13, %v2449_v13  ;;  %v2453_v15 = vpop.f32.mrb[9].mxu1 }
 0x10d   : > { %3254 = vst [vmem:[#allocation8_spill] sm:$0xff] %v2445_v10  ;;  %v1038_v11 = vadd.f32 %v951_v5, %v950_v3  ;;  %v958_v12 = vmul.f32 %v2445_v10, %v2445_v10  ;;  %3256 = vst [vmem:[#allocation10_spill] sm:$0xff] %v2453_v15  ;;  %v953_v17 = vmul.f32 %v2453_v15, %v2453_v15  ;;  %v2457_v60 = vpop.f32.mrb[10].mxu1 }
 0x10e   : > { %3257 = vst [vmem:[#allocation11_spill] sm:$0xff] %v2457_v60  ;;  %v959_v21 = vmul.f32 %v2457_v60, %v2457_v60  ;;  %v2461_v23 = vpop.f32.mrb[11].mxu1 }
 0x10f   : > { %v1046_v16 = vadd.f32 %v958_v12, %v957_v9  ;;  %v1039_v18 = vadd.f32 %v1038_v11, %v952_v14  ;;  %3258 = vst [vmem:[#allocation12_spill] sm:$0xff] %v2461_v23  ;;  %v960_v19 = vmul.f32 %v2461_v23, %v2461_v23  ;;  %v2820_v23 = vld [vmem:[%s2760_s23 + $0x28] sm:$0xff] }
 0x111   : > { %v2465_v24 = vpop.f32.mrb[12].mxu0  ;;  %v2467_v51 = vadd.f32 %v1039_v18, %v953_v17  ;;  %v1047_v20 = vadd.f32 %v1046_v16, %v959_v21 }
 0x112   : > { %3259 = vst [vmem:[#allocation13_spill] sm:$0xff] %v2465_v24  ;;  %v964_v25 = vmul.f32 %v2465_v24, %v2465_v24  ;;  %v2471_v27 = vpop.f32.mrb[13].mxu0 }
 0x113   : > { %3260 = vst [vmem:[#allocation14_spill] sm:$0xff] %v2471_v27  ;;  %v965_v28 = vmul.f32 %v2471_v27, %v2471_v27  ;;  %v2475_v30 = vpop.f32.mrb[14].mxu0  ;;  %v2477_v32 = vadd.f32 %v1047_v20, %v960_v19  ;;  %v2485_v41 = vpop.f32.mrb[12].mxu1 }
 0x114   : > { %3261 = vst [vmem:[#allocation15_spill] sm:$0xff] %v2475_v30  ;;  %v971_v33 = vmul.f32 %v2475_v30, %v2475_v30  ;;  %v2481_v35 = vpop.f32.mrb[15].mxu0  ;;  %3263 = vst [vmem:[#allocation17_spill] sm:$0xff] %v2485_v41  ;;  %v966_v42 = vmul.f32 %v2485_v41, %v2485_v41  ;;  %v2489_v44 = vpop.f32.mrb[13].mxu1 }
 0x115   : > { %3262 = vst [vmem:[#allocation16_spill] sm:$0xff] %v2481_v35  ;;  %v1054_v36 = vadd.f32 %v965_v28, %v964_v25  ;;  %v972_v38 = vmul.f32 %v2481_v35, %v2481_v35  ;;  %3264 = vst [vmem:[#allocation18_spill] sm:$0xff] %v2489_v44  ;;  %v967_v49 = vmul.f32 %v2489_v44, %v2489_v44  ;;  %v2493_v50 = vpop.f32.mrb[14].mxu1 }
 0x116   : > { %3265 = vst [vmem:[#allocation19_spill] sm:$0xff] %v2493_v50  ;;  %v973_v56 = vmul.f32 %v2493_v50, %v2493_v50  ;;  %v2497_v57 = vpop.f32.mrb[15].mxu1 }
 0x117   : > { %v1062_v47 = vadd.f32 %v972_v38, %v971_v33  ;;  %v1055_v54 = vadd.f32 %v1054_v36, %v966_v42  ;;  %3266 = vst [vmem:[#allocation20_spill] sm:$0xff] %v2497_v57  ;;  %v974_v59 = vmul.f32 %v2497_v57, %v2497_v57 }
 0x119   : > { %v2501_v61 = vpop.f32.mrb[16].mxu0  ;;  %v2503_v63 = vadd.f32 %v1055_v54, %v967_v49  ;;  %v1063_v2 = vadd.f32 %v1062_v47, %v973_v56 }
 0x11a   : > { %3267 = vst [vmem:[#allocation21_spill] sm:$0xff] %v2501_v61  ;;  %v978_v3 = vmul.f32 %v2501_v61, %v2501_v61  ;;  %v2507_v5 = vpop.f32.mrb[17].mxu0 }
 0x11b   : > { %3268 = vst [vmem:[#allocation22_spill] sm:$0xff] %v2507_v5  ;;  %v979_v9 = vmul.f32 %v2507_v5, %v2507_v5  ;;  %v2511_v11 = vpop.f32.mrb[18].mxu0  ;;  %v2513_v12 = vadd.f32 %v1063_v2, %v974_v59  ;;  %v2521_v21 = vpop.f32.mrb[16].mxu1 }
 0x11c   : > { %3269 = vst [vmem:[#allocation23_spill] sm:$0xff] %v2511_v11  ;;  %v985_v14 = vmul.f32 %v2511_v11, %v2511_v11  ;;  %v2517_v16 = vpop.f32.mrb[19].mxu0  ;;  %3271 = vst [vmem:[#allocation25_spill] sm:$0xff] %v2521_v21  ;;  %v980_v19 = vmul.f32 %v2521_v21, %v2521_v21  ;;  %v2525_v20 = vpop.f32.mrb[17].mxu1 }
 0x11d   : > { %3270 = vst [vmem:[#allocation24_spill] sm:$0xff] %v2517_v16  ;;  %v1070_v17 = vadd.f32 %v979_v9, %v978_v3  ;;  %v986_v18 = vmul.f32 %v2517_v16, %v2517_v16  ;;  %3272 = vst [vmem:[#allocation26_spill] sm:$0xff] %v2525_v20  ;;  %v981_v28 = vmul.f32 %v2525_v20, %v2525_v20  ;;  %v2529_v33 = vpop.f32.mrb[18].mxu1 }
 0x11e   : > { %3273 = vst [vmem:[#allocation27_spill] sm:$0xff] %v2529_v33  ;;  %v987_v38 = vmul.f32 %v2529_v33, %v2529_v33  ;;  %v2533_v42 = vpop.f32.mrb[19].mxu1 }
 0x11f   : > { %v1078_v25 = vadd.f32 %v986_v18, %v985_v14  ;;  %v1071_v36 = vadd.f32 %v1070_v17, %v980_v19  ;;  %3274 = vst [vmem:[#allocation28_spill] sm:$0xff] %v2533_v42  ;;  %v988_v47 = vmul.f32 %v2533_v42, %v2533_v42 }
 0x121   : > { %v2537_v49 = vpop.f32.mrb[20].mxu0  ;;  %v2539_v54 = vadd.f32 %v1071_v36, %v981_v28  ;;  %v1079_v56 = vadd.f32 %v1078_v25, %v987_v38 }
 0x122   : > { %3275 = vst [vmem:[#allocation29_spill] sm:$0xff] %v2537_v49  ;;  %v992_v59 = vmul.f32 %v2537_v49, %v2537_v49  ;;  %v2543_v2 = vpop.f32.mrb[21].mxu0 }
 0x123   : > { %3276 = vst [vmem:[#allocation30_spill] sm:$0xff] %v2543_v2  ;;  %v993_v3 = vmul.f32 %v2543_v2, %v2543_v2  ;;  %v2547_v9 = vpop.f32.mrb[22].mxu0  ;;  %v2549_v14 = vadd.f32 %v1079_v56, %v988_v47  ;;  %v2557_v28 = vpop.f32.mrb[20].mxu1 }
 0x124   : > { %3277 = vst [vmem:[#allocation31_spill] sm:$0xff] %v2547_v9  ;;  %v999_v17 = vmul.f32 %v2547_v9, %v2547_v9  ;;  %v2553_v18 = vpop.f32.mrb[23].mxu0  ;;  %3279 = vst [vmem:[#allocation33_spill] sm:$0xff] %v2557_v28  ;;  %v994_v36 = vmul.f32 %v2557_v28, %v2557_v28  ;;  %v2561_v38 = vpop.f32.mrb[21].mxu1 }
 0x125   : > { %3278 = vst [vmem:[#allocation32_spill] sm:$0xff] %v2553_v18  ;;  %v1086_v19 = vadd.f32 %v993_v3, %v992_v59  ;;  %v1000_v25 = vmul.f32 %v2553_v18, %v2553_v18  ;;  %3280 = vst [vmem:[#allocation34_spill] sm:$0xff] %v2561_v38  ;;  %v995_v47 = vmul.f32 %v2561_v38, %v2561_v38  ;;  %v2565_v56 = vpop.f32.mrb[22].mxu1 }
 0x126   : > { %3281 = vst [vmem:[#allocation35_spill] sm:$0xff] %v2565_v56  ;;  %v1001_v59 = vmul.f32 %v2565_v56, %v2565_v56  ;;  %v2569_v3 = vpop.f32.mrb[23].mxu1 }
 0x127   : > { %v1094_v2 = vadd.f32 %v1000_v25, %v999_v17  ;;  %v1087_v49 = vadd.f32 %v1086_v19, %v994_v36  ;;  %3282 = vst [vmem:[#allocation36_spill] sm:$0xff] %v2569_v3  ;;  %v1002_v18 = vmul.f32 %v2569_v3, %v2569_v3 }
 0x129   : > { %v2573_v9 = vpop.f32.mrb[24].mxu0  ;;  %v2575_v28 = vadd.f32 %v1087_v49, %v995_v47  ;;  %v1095_v20 = vadd.f32 %v1094_v2, %v1001_v59 }
 0x12a   : > { %v926_v17 = vmul.f32 %v2573_v9, %v2573_v9  ;;  %v2579_v25 = vpop.f32.mrb[25].mxu0 }
 0x12b   : > { %v927_v19 = vmul.f32 %v2579_v25, %v2579_v25  ;;  %v2583_v36 = vpop.f32.mrb[26].mxu0  ;;  %v2585_v38 = vadd.f32 %v1095_v20, %v1002_v18  ;;  %v2594_v47 = vpop.f32.mrb[24].mxu1 }
 0x12c   : > { %v1009_v56 = vadd.f32 %v2395_v40, %v926_v17  ;;  %v933_v3 = vmul.f32 %v2583_v36, %v2583_v36  ;;  %v2590_v49 = vpop.f32.mrb[27].mxu0  ;;  %v2597_v21 = vpop.f32.mrb[25].mxu1 }
 0x12d   : > { %v934_v2 = vmul.f32 %v2590_v49, %v2590_v49  ;;  %v928_v20 = vmul.f32 %v2597_v21, %v2597_v21  ;;  %v2601_v18 = vpop.f32.mrb[26].mxu1 }
 0x12e   : > { %v1017_v59 = vadd.f32 %v2405_v46, %v933_v3  ;;  %v1010_v5 = vadd.f32 %v1009_v56, %v927_v19  ;;  %v2603_v40 = vpop.f32.mrb[27].mxu1  ;;  %v949_v44 = vmul.f32 %v2601_v18, %v2601_v18 }
 0x12f   : > { %v935_v61 = vmul.f32 %v2603_v40, %v2603_v40 }
 0x130   : > { %v1018_v17 = vadd.f32 %v1017_v59, %v934_v2  ;;  %v1011_v33 = vadd.f32 %v1010_v5, %v928_v20  ;;  %v942_v2 = vmul.f32 %v2594_v47, %v2594_v47 }
 0x131   : > { %v2607_v42 = vpop.f32.mrb[28].mxu0 }
 0x132   : > { %v940_v46 = vmul.f32 %v2607_v42, %v2607_v42  ;;  %v2611_v3 = vpop.f32.mrb[29].mxu0  ;;  %1012 = vadd.xlane.f32.xlu0 %v1011_v33  ;;  %v1019_v16 = vadd.f32 %v1018_v17, %v935_v61 }
 0x133   : > { %v941_v56 = vmul.f32 %v2611_v3, %v2611_v3  ;;  %v2615_v19 = vpop.f32.mrb[30].mxu0  ;;  %v2626_v11 = vpop.f32.mrb[28].mxu1 }
 0x134   : > { %v1025_v59 = vadd.f32 %v2431_v1, %v940_v46  ;;  %v947_v5 = vmul.f32 %v2615_v19, %v2615_v19  ;;  %v2622_v20 = vpop.f32.mrb[31].mxu0  ;;  %1020 = vadd.xlane.f32.xlu1 %v1019_v16  ;;  %3283 = vst [vmem:[#allocation37_spill] sm:$0xff] %v2626_v11  ;;  %v2631_v41 = vpop.f32.mrb[29].mxu1 }
 0x135   : > { %v948_v33 = vmul.f32 %v2622_v20, %v2622_v20  ;;  %3284 = vst [vmem:[#allocation38_spill] sm:$0xff] %v2631_v41  ;;  %v2633_v1 = vpop.f32.mrb[30].mxu1 }
 0x136   : > { %v1033_v61 = vadd.f32 %v2441_v8, %v947_v5  ;;  %v1026_v17 = vadd.f32 %v1025_v59, %v941_v56  ;;  %3285 = vst [vmem:[#allocation39_spill] sm:$0xff] %v2633_v1  ;;  %v2635_v24 = vpop.f32.mrb[31].mxu1 }
 0x137   : > { %3286 = vst [vmem:[#allocation40_spill] sm:$0xff] %v2635_v24 }
 0x138   : > { %v1027_v46 = vadd.f32 %v1026_v17, %v942_v2  ;;  %v1034_v27 = vadd.f32 %v1033_v61, %v948_v33  ;;  %v956_v33 = vmul.f32 %v2631_v41, %v2631_v41  ;;  %v963_v17 = vmul.f32 %v2635_v24, %v2635_v24 }
 0x139   : > { %v2637_v16 = vpop.f32.mrb[32].mxu0 }
 0x13a   : > { %3287 = vst [vmem:[#allocation41_spill] sm:$0xff] %v2637_v16  ;;  %v954_v57 = vmul.f32 %v2637_v16, %v2637_v16  ;;  %1028 = vadd.xlane.f32.xlu0 %v1027_v46  ;;  %v2641_v50 = vpop.f32.mrb[33].mxu0  ;;  %v1035_v35 = vadd.f32 %v1034_v27, %v949_v44 }
 0x13b   : > { %3288 = vst [vmem:[#allocation42_spill] sm:$0xff] %v2641_v50  ;;  %v955_v8 = vmul.f32 %v2641_v50, %v2641_v50  ;;  %v2645_v56 = vpop.f32.mrb[34].mxu0  ;;  %v2656_v27 = vpop.f32.mrb[32].mxu1 }
 0x13c   : > { %3289 = vst [vmem:[#allocation43_spill] sm:$0xff] %v2645_v56  ;;  %v1041_v59 = vadd.f32 %v2467_v51, %v954_v57  ;;  %v961_v2 = vmul.f32 %v2645_v56, %v2645_v56  ;;  %1036 = vadd.xlane.f32.xlu1 %v1035_v35  ;;  %v2650_v5 = vpop.f32.mrb[35].mxu0  ;;  %3291 = vst [vmem:[#allocation45_spill] sm:$0xff] %v2656_v27  ;;  %v2661_v57 = vpop.f32.mrb[33].mxu1 }
 0x13d   : > { %3290 = vst [vmem:[#allocation44_spill] sm:$0xff] %v2650_v5  ;;  %v962_v61 = vmul.f32 %v2650_v5, %v2650_v5  ;;  %3292 = vst [vmem:[#allocation46_spill] sm:$0xff] %v2661_v57  ;;  %v2663_v46 = vpop.f32.mrb[34].mxu1 }
 0x13e   : > { %v1049_v44 = vadd.f32 %v2477_v32, %v961_v2  ;;  %v1042_v51 = vadd.f32 %v1041_v59, %v955_v8  ;;  %3293 = vst [vmem:[#allocation47_spill] sm:$0xff] %v2663_v46  ;;  %v2665_v50 = vpop.f32.mrb[35].mxu1  ;;  %v970_v2 = vmul.f32 %v2626_v11, %v2626_v11 }
 0x13f   : > { %3294 = vst [vmem:[#allocation48_spill] sm:$0xff] %v2665_v50 }
 0x140   : > { %v1043_v35 = vadd.f32 %v1042_v51, %v956_v33  ;;  %v1050_v30 = vadd.f32 %v1049_v44, %v962_v61 }
 0x141   : > { %v2667_v41 = vpop.f32.mrb[36].mxu0 }
 0x142   : > { %3295 = vst [vmem:[#allocation49_spill] sm:$0xff] %v2667_v41  ;;  %v968_v16 = vmul.f32 %v2667_v41, %v2667_v41  ;;  %1044 = vadd.xlane.f32.xlu0 %v1043_v35  ;;  %v2671_v5 = vpop.f32.mrb[37].mxu0  ;;  %v1051_v32 = vadd.f32 %v1050_v30, %v963_v17  ;;  %v977_v30 = vmul.f32 %v2633_v1, %v2633_v1 }
 0x143   : > { %3296 = vst [vmem:[#allocation50_spill] sm:$0xff] %v2671_v5  ;;  %v969_v8 = vmul.f32 %v2671_v5, %v2671_v5  ;;  %v2675_v59 = vpop.f32.mrb[38].mxu0 }
 0x144   : > { %3297 = vst [vmem:[#allocation51_spill] sm:$0xff] %v2675_v59  ;;  %v1057_v33 = vadd.f32 %v2503_v63, %v968_v16  ;;  %v975_v61 = vmul.f32 %v2675_v59, %v2675_v59  ;;  %1052 = vadd.xlane.f32.xlu1 %v1051_v32  ;;  %v2682_v44 = vpop.f32.mrb[39].mxu0 }
 0x145   : > { %3298 = vst [vmem:[#allocation52_spill] sm:$0xff] %v2682_v44  ;;  %v976_v51 = vmul.f32 %v2682_v44, %v2682_v44 }
 0x146   : > { %v1065_v17 = vadd.f32 %v2513_v12, %v975_v61  ;;  %v1058_v35 = vadd.f32 %v1057_v33, %v969_v8  ;;  %v991_v33 = vmul.f32 %v2665_v50, %v2665_v50 }
 0x148   : > { %v1059_v5 = vadd.f32 %v1058_v35, %v970_v2  ;;  %v1066_v41 = vadd.f32 %v1065_v17, %v976_v51  ;;  %v984_v2 = vmul.f32 %v2661_v57, %v2661_v57 }
 0x149   : > { %v2689_v11 = vpop.f32.mrb[40].mxu0 }
 0x14a   : > { %3299 = vst [vmem:[#allocation53_spill] sm:$0xff] %v2689_v11  ;;  %v982_v63 = vmul.f32 %v2689_v11, %v2689_v11  ;;  %1060 = vadd.xlane.f32.xlu0 %v1059_v5  ;;  %v2693_v16 = vpop.f32.mrb[41].mxu0  ;;  %v1067_v32 = vadd.f32 %v1066_v41, %v977_v30 }
 0x14b   : > { %3300 = vst [vmem:[#allocation54_spill] sm:$0xff] %v2693_v16  ;;  %v983_v44 = vmul.f32 %v2693_v16, %v2693_v16  ;;  %v2697_v59 = vpop.f32.mrb[42].mxu0 }
 0x14c   : > { %3301 = vst [vmem:[#allocation55_spill] sm:$0xff] %v2697_v59  ;;  %v1073_v1 = vadd.f32 %v2539_v54, %v982_v63  ;;  %v989_v12 = vmul.f32 %v2697_v59, %v2697_v59  ;;  %1068 = vadd.xlane.f32.xlu1 %v1067_v32  ;;  %v2702_v8 = vpop.f32.mrb[43].mxu0 }
 0x14d   : > { %3302 = vst [vmem:[#allocation56_spill] sm:$0xff] %v2702_v8  ;;  %v990_v5 = vmul.f32 %v2702_v8, %v2702_v8 }
 0x14e   : > { %v1081_v41 = vadd.f32 %v2549_v14, %v989_v12  ;;  %v1074_v61 = vadd.f32 %v1073_v1, %v983_v44 }
 0x150   : > { %v1075_v51 = vadd.f32 %v1074_v61, %v984_v2  ;;  %v1082_v54 = vadd.f32 %v1081_v41, %v990_v5  ;;  %v998_v2 = vmul.f32 %v2656_v27, %v2656_v27 }
 0x151   : > { %v2711_v30 = vpop.f32.mrb[44].mxu0 }
 0x152   : > { %3303 = vst [vmem:[#allocation57_spill] sm:$0xff] %v2711_v30  ;;  %v996_v17 = vmul.f32 %v2711_v30, %v2711_v30  ;;  %1076 = vadd.xlane.f32.xlu0 %v1075_v51  ;;  %v2715_v35 = vpop.f32.mrb[45].mxu0  ;;  %v1083_v63 = vadd.f32 %v1082_v54, %v991_v33  ;;  %v1005_v33 = vmul.f32 %v2663_v46, %v2663_v46 }
 0x153   : > { %3304 = vst [vmem:[#allocation58_spill] sm:$0xff] %v2715_v35  ;;  %v997_v32 = vmul.f32 %v2715_v35, %v2715_v35  ;;  %v2719_v57 = vpop.f32.mrb[46].mxu0 }
 0x154   : > { %3305 = vst [vmem:[#allocation59_spill] sm:$0xff] %v2719_v57  ;;  %v1089_v14 = vadd.f32 %v2575_v28, %v996_v17  ;;  %v1003_v1 = vmul.f32 %v2719_v57, %v2719_v57  ;;  %1084 = vadd.xlane.f32.xlu1 %v1083_v63  ;;  %v2724_v44 = vpop.f32.mrb[47].mxu0 }
 0x155   : > { %3306 = vst [vmem:[#allocation60_spill] sm:$0xff] %v2724_v44  ;;  %v1004_v12 = vmul.f32 %v2724_v44, %v2724_v44 }
 0x156   : > { %v1097_v5 = vadd.f32 %v2585_v38, %v1003_v1  ;;  %v1090_v41 = vadd.f32 %v1089_v14, %v997_v32 }
 0x158   : > { %v1098_v61 = vadd.f32 %v1097_v5, %v1004_v12  ;;  %v1091_v28 = vadd.f32 %v1090_v41, %v998_v2 }
 0x15a   : > { %1092 = vadd.xlane.f32.xlu0 %v1091_v28  ;;  %v1099_v51 = vadd.f32 %v1098_v61, %v1005_v33 }
 0x15c   : > { %1100 = vadd.xlane.f32.xlu1 %v1099_v51 }
 0x19c   : > { %v1826_v54 = vpop.f32.mrb[36].mxu1 }
 0x19d   : > { %v851_v17 = vpop.f32.mrb[37].mxu1  ;;  %v911_v12 = vmul.f32 0.0012755102, %v1826_v54 }
 0x19e   : > { %v910_v1 = vmul.f32 0.0012755102, %v851_v17 }
 0x19f   : > { %v1115_v41 = vmul.f32 %v911_v12, %v911_v12 }
 0x1a0   : > { %v1829_v63 = vpop.f32.mrb[38].mxu1  ;;  %v1114_v2 = vmul.f32 %v910_v1, %v910_v1 }
 0x1a1   : > { %v861_v35 = vpop.f32.mrb[39].mxu1  ;;  %v2743_v16 = vmul.f32 0.0012755102, %v1829_v63 }
 0x1a2   : > { %v2741_v28 = vmul.f32 0.0012755102, %v861_v35 }
 0x1a3   : > { %v1117_v54 = vmul.f32 %v2743_v16, %v2743_v16 }
 0x1a4   : > { %v1832_v30 = vpop.f32.mrb[40].mxu1  ;;  %v1116_v59 = vmul.f32 %v2741_v28, %v2741_v28 }
 0x1a5   : > { %v871_v44 = vpop.f32.mrb[41].mxu1 }
 0x1a6   : > { %v2749_v63 = vmul.f32 0.0012755102, %v871_v44 }
 0x1a8   : > { %v1835_v57 = vpop.f32.mrb[42].mxu1 }
 0x1a9   : > { %v881_v50 = vpop.f32.mrb[43].mxu1 }
 0x1aa   : > { %v2764_v44 = vmul.f32 0.0012755102, %v881_v50 }
 0x1ac   : > { %v2733_v27 = vpop.f32.mrb[44].mxu1  ;;  %v1120_v50 = vmul.f32 %v2764_v44, %v2764_v44 }
 0x1ad   : > { %v2735_v38 = vpop.f32.mrb[45].mxu1  ;;  %v2801_v0 = vmul.f32 0.0012755102, %v2733_v27 }
 0x1af   : > { %v1123_v27 = vmul.f32 %v2801_v0, %v2801_v0 }
 0x1b0   : > { %v2737_v32 = vpop.f32.mrb[46].mxu1 }
 0x1b1   : > { %v2739_v14 = vpop.f32.mrb[47].mxu1  ;;  %v921_v60 = vmul.f32 0.0012755102, %v2737_v32 }
 0x1b2   : > { %v920_v56 = vmul.f32 0.0012755102, %v2739_v14 }
 0x1bf   : > { %v1013_v5 = vpop.xlane.xlu0 %1012 }
 0x1c0   : > { %v1102_v33 = vmul.f32 0.0012755102, %v1013_v5 }
 0x1c1   : > { %v1021_v61 = vpop.xlane.xlu1 %1020 }
 0x1c2   : > { %v1126_v51 = vsub.f32 %v1102_v33, %v1114_v2  ;;  %v1103_v46 = vmul.f32 0.0012755102, %v1021_v61  ;;  %v2751_v61 = vmul.f32 0.0012755102, %v1832_v30 }
 0x1c4   : > { %v1138_v11 = vmax.f32 %v1126_v51, 0.0  ;;  %v1127_v8 = vsub.f32 %v1103_v46, %v1115_v41  ;;  %v1118_v51 = vmul.f32 %v2749_v63, %v2749_v63 }
 0x1c6   : > { %v1162_v24 = vadd.f32 1e-05, %v1138_v11  ;;  %v1139_v15 = vmax.f32 %v1127_v8, 0.0 }
 0x1c7   : > { %v1029_v17 = vpop.xlane.xlu0 %1028 }
 0x1c8   : > { %v1104_v5 = vmul.f32 0.0012755102, %v1029_v17  ;;  %1901 = vrsqrt.f32 %v1162_v24  ;;  %v1163_v35 = vadd.f32 1e-05, %v1139_v15  ;;  %v1119_v24 = vmul.f32 %v2751_v61, %v2751_v61  ;;  %v2767_v17 = vld [vmem:[%s2760_s23] sm:$0xff] }
 0x1c9   : > { %v1037_v13 = vpop.xlane.xlu1 %1036 }
 0x1ca   : > { %v1128_v2 = vsub.f32 %v1104_v5, %v1116_v59  ;;  %v1105_v33 = vmul.f32 0.0012755102, %v1037_v13  ;;  %1903 = vrsqrt.f32 %v1163_v35 }
 0x1cc   : > { %v1140_v46 = vmax.f32 %v1128_v2, 0.0  ;;  %v1129_v41 = vsub.f32 %v1105_v33, %v1117_v54  ;;  %v2769_v2 = vmul.f32 0.0012755102, %v1835_v57  ;;  %v2772_v33 = vld [vmem:[%s2760_s23 + $0x8] sm:$0xff] }
 0x1ce   : > { %v1164_v11 = vadd.f32 1e-05, %v1140_v46  ;;  %v1141_v8 = vmax.f32 %v1129_v41, 0.0  ;;  %v1121_v57 = vmul.f32 %v2769_v2, %v2769_v2 }
 0x1cf   : > { %v1045_v13 = vpop.xlane.xlu0 %1044 }
 0x1d0   : > { %1905 = vrsqrt.f32 %v1164_v11  ;;  %v1165_v15 = vadd.f32 1e-05, %v1141_v8  ;;  %v1106_v59 = vmul.f32 0.0012755102, %v1045_v13 }
 0x1d1   : > { %v1053_v30 = vpop.xlane.xlu1 %1052 }
 0x1d2   : > { %1907 = vrsqrt.f32 %v1165_v15  ;;  %v1130_v54 = vsub.f32 %v1106_v59, %v1118_v51  ;;  %v1107_v5 = vmul.f32 0.0012755102, %v1053_v30  ;;  %v1902_v35 = vpop.eup %1901 }
 0x1d3   : > { %v2775_v11 = vmul.f32 %v1902_v35, %v2767_v17 }
 0x1d4   : > { %v1142_v46 = vmax.f32 %v1130_v54, 0.0  ;;  %v1131_v41 = vsub.f32 %v1107_v5, %v1119_v24  ;;  %v1904_v8 = vpop.eup %1903  ;;  %v2788_v5 = vld [vmem:[%s2760_s23 + $0x10] sm:$0xff] }
 0x1d5   : > { %v1198_v51 = vmul.f32 %v2775_v11, %v910_v1  ;;  %v2781_v15 = vmul.f32 %v1904_v8, %v2772_v33  ;;  %v2792_v8 = vmul.f32 0.0012755102, %v2735_v38 }
 0x1d6   : > { %v1166_v13 = vadd.f32 1e-05, %v1142_v46  ;;  %v1143_v4 = vmax.f32 %v1131_v41, 0.0 }
 0x1d7   : > { %v1061_v24 = vpop.xlane.xlu0 %1060  ;;  %1222 = vrot.lane.b32.xlu0 %v1198_v51, %s1990_s7  ;;  %v1199_v54 = vmul.f32 %v2781_v15, %v911_v12 }
 0x1d8   : > { %1909 = vrsqrt.f32 %v1166_v13  ;;  %v1167_v59 = vadd.f32 1e-05, %v1143_v4  ;;  %v1108_v30 = vmul.f32 0.0012755102, %v1061_v24  ;;  %v2795_v13 = vld [vmem:[%s2760_s23 + $0x18] sm:$0xff] }
 0x1d9   : > { %v1069_v35 = vpop.xlane.xlu1 %1068  ;;  %1224 = vrot.lane.b32.xlu1 %v1199_v54, %s1990_s7  ;;  %v1122_v54 = vmul.f32 %v2792_v8, %v2792_v8 }
 0x1da   : > { %v1906_v1 = vpop.eup %1905  ;;  %1911 = vrsqrt.f32 %v1167_v59  ;;  %v1132_v46 = vsub.f32 %v1108_v30, %v1120_v50  ;;  %v1109_v41 = vmul.f32 0.0012755102, %v1069_v35 }
 0x1db   : > { %v2798_v4 = vmul.f32 %v1906_v1, %v2788_v5 }
 0x1dc   : > { %v1908_v51 = vpop.eup %1907  ;;  %v1144_v12 = vmax.f32 %v1132_v46, 0.0  ;;  %v1133_v24 = vsub.f32 %v1109_v41, %v1121_v57  ;;  %v2814_v46 = vld [vmem:[%s2760_s23 + $0x20] sm:$0xff] }
 0x1dd   : > { %v1200_v50 = vmul.f32 %v2798_v4, %v2741_v28  ;;  %v2806_v59 = vmul.f32 %v1908_v51, %v2795_v13 }
 0x1de   : > { %v1168_v38 = vadd.f32 1e-05, %v1144_v12  ;;  %v1145_v30 = vmax.f32 %v1133_v24, 0.0 }
 0x1df   : > { %v1077_v35 = vpop.xlane.xlu0 %1076  ;;  %1226 = vrot.lane.b32.xlu1 %v1200_v50, %s1990_s7  ;;  %v1201_v41 = vmul.f32 %v2806_v59, %v2743_v16 }
 0x1e0   : > { %1913 = vrsqrt.f32 %v1168_v38  ;;  %v1169_v57 = vadd.f32 1e-05, %v1145_v30  ;;  %v1110_v1 = vmul.f32 0.0012755102, %v1077_v35 }
 0x1e1   : > { %v1085_v28 = vpop.xlane.xlu1 %1084 }
 0x1e2   : > { %v1910_v51 = vpop.eup %1909  ;;  %1915 = vrsqrt.f32 %v1169_v57  ;;  %v1134_v12 = vsub.f32 %v1110_v1, %v1122_v54  ;;  %v1111_v24 = vmul.f32 0.0012755102, %v1085_v28  ;;  %v1124_v1 = vmul.f32 %v920_v56, %v920_v56 }
 0x1e3   : > { %1228 = vrot.lane.b32.xlu1 %v1201_v41, %s1990_s7  ;;  %v2824_v50 = vmul.f32 %v1910_v51, %v2814_v46 }
 0x1e4   : > { %v1912_v38 = vpop.eup %1911  ;;  %v1146_v30 = vmax.f32 %v1134_v12, 0.0  ;;  %v1135_v35 = vsub.f32 %v1111_v24, %v1123_v27  ;;  %v1125_v12 = vmul.f32 %v921_v60, %v921_v60  ;;  %v2833_v24 = vld [vmem:[%s2760_s23 + $0x30] sm:$0xff] }
 0x1e5   : > { %v1202_v16 = vmul.f32 %v2824_v50, %v2749_v63  ;;  %v1191_v54 = vmul.f32 %v1912_v38, %v2820_v23 }
 0x1e6   : > { %v1170_v57 = vadd.f32 1e-05, %v1146_v30  ;;  %v1147_v14 = vmax.f32 %v1135_v35, 0.0  ;;  %v2837_v35 = vld [vmem:[%s2760_s23 + $0x38] sm:$0xff] }
 0x1e7   : > { %1230 = vrot.lane.b32.xlu0 %v1202_v16, %s1990_s7  ;;  %v1093_v28 = vpop.xlane.xlu0 %1092  ;;  %v1203_v41 = vmul.f32 %v1191_v54, %v2751_v61 }
 0x1e8   : > { %1917 = vrsqrt.f32 %v1170_v57  ;;  %v1171_v51 = vadd.f32 1e-05, %v1147_v14  ;;  %v1112_v27 = vmul.f32 0.0012755102, %v1093_v28 }
 0x1e9   : > { %1232 = vrot.lane.b32.xlu1 %v1203_v41, %s1990_s7  ;;  %v1101_v32 = vpop.xlane.xlu1 %1100 }
 0x1ea   : > { %v1914_v63 = vpop.eup %1913  ;;  %1919 = vrsqrt.f32 %v1171_v51  ;;  %v1136_v38 = vsub.f32 %v1112_v27, %v1124_v1  ;;  %v1113_v30 = vmul.f32 0.0012755102, %v1101_v32  ;;  %v2845_v27 = vld [vmem:[%s2760_s23 + $0x40] sm:$0xff] }
 0x1eb   : > { %v1192_v16 = vmul.f32 %v1914_v63, %v2833_v24 }
 0x1ec   : > { %v1916_v61 = vpop.eup %1915  ;;  %v1148_v57 = vmax.f32 %v1136_v38, 0.0  ;;  %v1137_v14 = vsub.f32 %v1113_v30, %v1125_v12  ;;  %v1159_v12 = vld [vmem:[%s2760_s23 + $0x48] sm:$0xff] }
 0x1ed   : > { %v1204_v28 = vmul.f32 %v1192_v16, %v2764_v44  ;;  %v1193_v10 = vmul.f32 %v1916_v61, %v2837_v35 }
 0x1ee   : > { %v1172_v6 = vadd.f32 1e-05, %v1148_v57  ;;  %v1149_v41 = vmax.f32 %v1137_v14, 0.0  ;;  %v1161_v57 = vld [vmem:[%s2760_s23 + $0x58] sm:$0xff] }
 0x1ef   : > { %1234 = vrot.lane.b32.xlu0 %v1204_v28, %s1990_s7  ;;  %v1205_v1 = vmul.f32 %v1193_v10, %v2769_v2 }
 0x1f0   : > { %1921 = vrsqrt.f32 %v1172_v6  ;;  %v1173_v51 = vadd.f32 1e-05, %v1149_v41  ;;  %v1160_v6 = vld [vmem:[%s2760_s23 + $0x50] sm:$0xff] }
 0x1f1   : > { %1236 = vrot.lane.b32.xlu1 %v1205_v1, %s1990_s7 }
 0x1f2   : > { %v1918_v32 = vpop.eup %1917  ;;  %1923 = vrsqrt.f32 %v1173_v51 }
 0x1f3   : > { %v1194_v44 = vmul.f32 %v1918_v32, %v2845_v27 }
 0x1f4   : > { %v1920_v63 = vpop.eup %1919 }
 0x1f5   : > { %v1206_v38 = vmul.f32 %v1194_v44, %v2792_v8  ;;  %v1195_v30 = vmul.f32 %v1920_v63, %v1159_v12 }
 0x1f7   : > { %1238 = vrot.lane.b32.xlu0 %v1206_v38, %s1990_s7  ;;  %v1207_v2 = vmul.f32 %v1195_v30, %v2801_v0  ;;  %v1991_v0 = vmov 1  }
 0x1f9   : > { %1240 = vrot.lane.b32.xlu1 %v1207_v2, %s1990_s7 }
 0x1fa   : > { %v1922_v61 = vpop.eup %1921 }
 0x1fb   : > { %v1196_v14 = vmul.f32 %v1922_v61, %v1160_v6 }
 0x1fc   : > { %v1924_v28 = vpop.eup %1923 }
 0x1fd   : > { %v1208_v41 = vmul.f32 %v1196_v14, %v920_v56  ;;  %v1197_v1 = vmul.f32 %v1924_v28, %v1161_v57 }
 0x1ff   : > { %1242 = vrot.lane.b32.xlu0 %v1208_v41, %s1990_s7  ;;  %v1209_v51 = vmul.f32 %v1197_v1, %v921_v60 }
 0x201   : > { %1244 = vrot.lane.b32.xlu1 %v1209_v51, %s1990_s7 }
 0x203   : > { %1272 = vperm.xlu0 %1897, %v2775_v11  }
 0x205   : > { %1277 = vperm.xlu1 %1898, %v2781_v15  }
 0x207   : > { %1287 = vperm.xlu0 %1897, %v2806_v59  }
 0x209   : > { %1282 = vperm.xlu1 %1898, %v2798_v4  }
 0x20b   : > { %1297 = vperm.xlu0 %1897, %v1191_v54  }
 0x20d   : > { %1292 = vperm.xlu1 %1898, %v2824_v50  }
 0x20f   : > { %1307 = vperm.xlu0 %1897, %v1193_v10  }
 0x211   : > { %1302 = vperm.xlu1 %1898, %v1192_v16  }
 0x213   : > { %1317 = vperm.xlu0 %1897, %v1195_v30  }
 0x215   : > { %1312 = vperm.xlu1 %1898, %v1194_v44  }
 0x217   : > { %1327 = vperm.xlu0 %1897, %v1197_v1  }
 0x219   : > { %1322 = vperm.xlu1 %1898, %v1196_v14  }
 0x21b   : > { %1900 = vset.pattern.permute.xlu0 %v1991_v0 }
 0x21d   : > { %1899 = vset.pattern.permute.xlu1 %v1991_v0 }
 0x249   : > { %v1223_v60 = vpop.permute.xlu0 %1222 }
 0x24a   : > { %v1258_v56 = vsub.f32 %v2767_v17, %v1223_v60 }
 0x24b   : > { %v1225_v11 = vpop.permute.xlu1 %1224 }
 0x24c   : > { %v1259_v15 = vsub.f32 %v2772_v33, %v1225_v11  ;;  %1416 = vperm.xlu1 %1899, %v1258_v56  }
 0x24e   : > { %1421 = vperm.xlu0 %1900, %v1259_v15  }
 0x251   : > { %v1227_v8 = vpop.permute.xlu1 %1226 }
 0x252   : > { %v1260_v4 = vsub.f32 %v2788_v5, %v1227_v8 }
 0x254   : > { %1426 = vperm.xlu1 %1899, %v1260_v4  }
 0x255   : > { %v1229_v10 = vpop.permute.xlu1 %1228 }
 0x256   : > { %v1261_v59 = vsub.f32 %v2795_v13, %v1229_v10 }
 0x258   : > { %1431 = vperm.xlu1 %1899, %v1261_v59  }
 0x259   : > { %v1231_v50 = vpop.permute.xlu0 %1230 }
 0x25a   : > { %v1262_v54 = vsub.f32 %v2814_v46, %v1231_v50 }
 0x25b   : > { %v1233_v16 = vpop.permute.xlu1 %1232 }
 0x25c   : > { %v1263_v32 = vsub.f32 %v2820_v23, %v1233_v16  ;;  %1436 = vperm.xlu0 %1900, %v1262_v54  }
 0x25e   : > { %1441 = vperm.xlu1 %1899, %v1263_v32  }
 0x261   : > { %v1235_v17 = vpop.permute.xlu0 %1234 }
 0x262   : > { %v1264_v33 = vsub.f32 %v2833_v24, %v1235_v17 }
 0x263   : > { %v1237_v44 = vpop.permute.xlu1 %1236 }
 0x264   : > { %v1265_v63 = vsub.f32 %v2837_v35, %v1237_v44  ;;  %1446 = vperm.xlu0 %1900, %v1264_v33  }
 0x266   : > { %1451 = vperm.xlu1 %1899, %v1265_v63  }
 0x269   : > { %v1239_v5 = vpop.permute.xlu0 %1238 }
 0x26a   : > { %v1266_v13 = vsub.f32 %v2845_v27, %v1239_v5 }
 0x26b   : > { %v1241_v38 = vpop.permute.xlu1 %1240 }
 0x26c   : > { %v1267_v30 = vsub.f32 %v1159_v12, %v1241_v38  ;;  %1456 = vperm.xlu0 %1900, %v1266_v13  }
 0x26e   : > { %1461 = vperm.xlu1 %1899, %v1267_v30  }
 0x271   : > { %v1243_v46 = vpop.permute.xlu0 %1242 }
 0x272   : > { %v1268_v23 = vsub.f32 %v1160_v6, %v1243_v46 }
 0x273   : > { %v1245_v2 = vpop.permute.xlu1 %1244 }
 0x274   : > { %v1269_v61 = vsub.f32 %v1161_v57, %v1245_v2  ;;  %1466 = vperm.xlu0 %1900, %v1268_v23  }
 0x276   : > { %1471 = vperm.xlu1 %1899, %v1269_v61  }
 0x282   : > { %v1273_v14 = vpop.permute.xlu0 %1272 }
 0x283   : > { %v1330_v0 = vmul.f32 %v1273_v14, %v2361_v7  ;;  %v1331_v60 = vmul.f32 %v1273_v14, %v2365_v52  ;;  %v1332_v56 = vmul.f32 %v1273_v14, %v2377_v29  ;;  %v1333_v11 = vmul.f32 %v1273_v14, %v2381_v31 }
 0x284   : > { %v1278_v24 = vpop.permute.xlu1 %1277  ;;  %v1334_v15 = vmul.f32 %v1273_v14, %v2573_v9  ;;  %v1335_v4 = vmul.f32 %v1273_v14, %v2579_v25  ;;  %v1336_v10 = vmul.f32 %v1273_v14, %v2597_v21 }
 0x285   : > { %v1337_v59 = vmul.f32 %v1278_v24, %v2369_v22  ;;  %v1338_v50 = vmul.f32 %v1278_v24, %v2373_v26  ;;  %v1339_v7 = vmul.f32 %v1278_v24, %v2385_v34  ;;  %v1340_v52 = vmul.f32 %v1278_v24, %v2389_v37 }
 0x286   : > { %v2874_v28 = vpop.permute.xlu0 %1287  ;;  %v1341_v29 = vmul.f32 %v1278_v24, %v2583_v36  ;;  %v1342_v31 = vmul.f32 %v1278_v24, %v2590_v49  ;;  %v1343_v25 = vmul.f32 %v1278_v24, %v2603_v40 }
 0x287   : > { %v1351_v5 = vmul.f32 %v2874_v28, %v2403_v45  ;;  %v1352_v45 = vmul.f32 %v2874_v28, %v2409_v48  ;;  %v1353_v48 = vmul.f32 %v2874_v28, %v2421_v58  ;;  %v3307_v58 = vld [vmem:[#allocation7_spill] sm:$0xff] }
 0x288   : > { %v2872_v35 = vpop.permute.xlu1 %1282 }
 0x289   : > { %v1344_v13 = vmul.f32 %v2872_v35, %v2393_v39  ;;  %v1345_v38 = vmul.f32 %v2872_v35, %v2399_v43  ;;  %v1346_v30 = vmul.f32 %v2872_v35, %v2413_v53  ;;  %v1347_v46 = vmul.f32 %v2872_v35, %v2417_v55 }
 0x28a   : > { %v2878_v27 = vpop.permute.xlu0 %1297  ;;  %v1348_v23 = vmul.f32 %v2872_v35, %v2607_v42  ;;  %v1349_v39 = vmul.f32 %v2872_v35, %v2611_v3  ;;  %v1350_v43 = vmul.f32 %v2594_v47, %v2872_v35  ;;  %v1355_v47 = vmul.f32 %v2874_v28, %v2615_v19  ;;  %v3310_v19 = vld [vmem:[#allocation12_spill] sm:$0xff] }
 0x28b   : > { %v1356_v35 = vmul.f32 %v2874_v28, %v2622_v20 }
 0x28c   : > { %v2876_v41 = vpop.permute.xlu1 %1292 }
 0x28e   : > { %v2882_v1 = vpop.permute.xlu0 %1307 }
 0x290   : > { %v2880_v12 = vpop.permute.xlu1 %1302 }
 0x292   : > { %v2886_v51 = vpop.permute.xlu0 %1317 }
 0x294   : > { %v2884_v6 = vpop.permute.xlu1 %1312 }
 0x296   : > { %v2898_v8 = vpop.permute.xlu0 %1327 }
 0x298   : > { %v2889_v57 = vpop.permute.xlu1 %1322 }
 0x2cb   : > { %v1417_v54 = vpop.permute.xlu1 %1416 }
 0x2cc   : > { %v1474_v9 = vadd.f32 %v1417_v54, %v1330_v0  ;;  %v1475_v16 = vadd.f32 %v1417_v54, %v1331_v60  ;;  %v1476_v32 = vadd.f32 %v1417_v54, %v1332_v56  ;;  %v1477_v17 = vadd.f32 %v1417_v54, %v1333_v11  ;;  %v3308_v11 = vld [vmem:[#allocation8_spill] sm:$0xff] }
 0x2cd   : > { %v1478_v21 = vadd.f32 %v1417_v54, %v1334_v15  ;;  %v1479_v33 = vadd.f32 %v1417_v54, %v1335_v4  ;;  %v1480_v22 = vadd.f32 %v1417_v54, %v1336_v10  ;;  %v1422_v44 = vpop.permute.xlu0 %1421  ;;  %v1354_v0 = vmul.f32 %v2874_v28, %v2425_v62  ;;  %v3309_v62 = vld [vmem:[#allocation11_spill] sm:$0xff] }
 0x2ce   : > { %1558 = vst [vmem:[%s2909_s28] sm:$0xff] %v1474_v9  ;;  %1559 = vst [vmem:[%s2909_s28 + $0x8] sm:$0xff] %v1475_v16  ;;  %v1481_v26 = vadd.f32 %v1422_v44, %v1337_v59  ;;  %v1482_v34 = vadd.f32 %v1422_v44, %v1338_v50  ;;  %v1483_v37 = vadd.f32 %v1422_v44, %v1339_v7  ;;  %v3311_v7 = vld [vmem:[#allocation43_spill] sm:$0xff]  ;;  %v3312_v9 = vld [vmem:[#allocation5_spill] sm:$0xff] }
 0x2cf   : > { %1560 = vst [vmem:[%s2909_s28 + $0x10] sm:$0xff] %v1476_v32  ;;  %1561 = vst [vmem:[%s2909_s28 + $0x18] sm:$0xff] %v1477_v17  ;;  %v1484_v36 = vadd.f32 %v1422_v44, %v1340_v52  ;;  %v1485_v49 = vadd.f32 %v1422_v44, %v1341_v29  ;;  %v1486_v40 = vadd.f32 %v1422_v44, %v1342_v31  ;;  %v3313_v32 = vld [vmem:[#allocation6_spill] sm:$0xff] }
 0x2d0   : > { %1562 = vst [vmem:[%s2909_s28 + $0x20] sm:$0xff] %v1478_v21  ;;  %1563 = vst [vmem:[%s2909_s28 + $0x28] sm:$0xff] %v1479_v33  ;;  %v1487_v63 = vadd.f32 %v1422_v44, %v1343_v25  ;;  %v1357_v60 = vmul.f32 %v2601_v18, %v2874_v28  ;;  %v1365_v56 = vmul.f32 %v2878_v27, %v3307_v58  ;;  %v3314_v25 = vld [vmem:[#allocation9_spill] sm:$0xff]  ;;  %v3315_v33 = vld [vmem:[#allocation10_spill] sm:$0xff] }
 0x2d1   : > { %1564 = vst [vmem:[%s2909_s28 + $0x30] sm:$0xff] %v1480_v22  ;;  %1565 = vst [vmem:[%s2909_s28 + $0x38] sm:$0xff] %v1481_v26  ;;  %v1366_v15 = vmul.f32 %v2878_v27, %v3308_v11  ;;  %v1367_v4 = vmul.f32 %v2878_v27, %v3309_v62  ;;  %v1368_v10 = vmul.f32 %v2878_v27, %v3310_v19  ;;  %v3316_v44 = vld [vmem:[#allocation44_spill] sm:$0xff]  ;;  %v3325_v11 = vld [vmem:[#allocation51_spill] sm:$0xff] }
 0x2d2   : > { %1566 = vst [vmem:[%s2909_s28 + $0x40] sm:$0xff] %v1482_v34  ;;  %1567 = vst [vmem:[%s2909_s28 + $0x48] sm:$0xff] %v1483_v37  ;;  %v1369_v52 = vmul.f32 %v2878_v27, %v3311_v7  ;;  %v1358_v16 = vmul.f32 %v2876_v41, %v3312_v9  ;;  %v1359_v17 = vmul.f32 %v2876_v41, %v3313_v32  ;;  %v3317_v34 = vld [vmem:[#allocation41_spill] sm:$0xff]  ;;  %v3324_v58 = vld [vmem:[#allocation20_spill] sm:$0xff] }
 0x2d3   : > { %1568 = vst [vmem:[%s2909_s28 + $0x50] sm:$0xff] %v1484_v36  ;;  %1569 = vst [vmem:[%s2909_s28 + $0x58] sm:$0xff] %v1485_v49  ;;  %v1427_v53 = vpop.permute.xlu1 %1426  ;;  %v1360_v21 = vmul.f32 %v2876_v41, %v3314_v25  ;;  %v1361_v22 = vmul.f32 %v2876_v41, %v3315_v33  ;;  %v1370_v26 = vmul.f32 %v2878_v27, %v3316_v44  ;;  %v3318_v36 = vld [vmem:[#allocation42_spill] sm:$0xff]  ;;  %v3326_v62 = vld [vmem:[#allocation13_spill] sm:$0xff] }
 0x2d4   : > { %1570 = vst [vmem:[%s2909_s28 + $0x60] sm:$0xff] %v1486_v40  ;;  %1571 = vst [vmem:[%s2909_s28 + $0x68] sm:$0xff] %v1487_v63  ;;  %v1488_v55 = vadd.f32 %v1427_v53, %v1344_v13  ;;  %v1489_v2 = vadd.f32 %v1427_v53, %v1345_v38  ;;  %v1490_v61 = vadd.f32 %v1427_v53, %v1346_v30  ;;  %v3319_v40 = vld [vmem:[#allocation38_spill] sm:$0xff]  ;;  %v3333_v9 = vld [vmem:[#allocation37_spill] sm:$0xff] }
 0x2d5   : > { %v1491_v24 = vadd.f32 %v1427_v53, %v1347_v46  ;;  %v1492_v42 = vadd.f32 %v1427_v53, %v1348_v23  ;;  %v1493_v14 = vadd.f32 %v1427_v53, %v1349_v39  ;;  %v1494_v3 = vadd.f32 %v1427_v53, %v1350_v43  ;;  %v3327_v19 = vld [vmem:[#allocation14_spill] sm:$0xff] }
 0x2d6   : > { %1572 = vst [vmem:[%s2909_s28 + $0x70] sm:$0xff] %v1488_v55  ;;  %1573 = vst [vmem:[%s2909_s28 + $0x78] sm:$0xff] %v1489_v2  ;;  %v1362_v37 = vmul.f32 %v2876_v41, %v3317_v34  ;;  %v1363_v49 = vmul.f32 %v2876_v41, %v3318_v36  ;;  %v1364_v63 = vmul.f32 %v2876_v41, %v3319_v40 }
 0x2d7   : > { %1574 = vst [vmem:[%s2909_s28 + $0x80] sm:$0xff] %v1490_v61  ;;  %1575 = vst [vmem:[%s2909_s28 + $0x88] sm:$0xff] %v1491_v24  ;;  %v1432_v18 = vpop.permute.xlu1 %1431 }
 0x2d8   : > { %1576 = vst [vmem:[%s2909_s28 + $0x90] sm:$0xff] %v1492_v42  ;;  %1577 = vst [vmem:[%s2909_s28 + $0x98] sm:$0xff] %v1493_v14  ;;  %v1495_v20 = vadd.f32 %v1432_v18, %v1351_v5  ;;  %v1496_v28 = vadd.f32 %v1432_v18, %v1352_v45  ;;  %v1497_v59 = vadd.f32 %v1432_v18, %v1353_v48  ;;  %v3320_v45 = vld [vmem:[#allocation40_spill] sm:$0xff]  ;;  %v3321_v14 = vld [vmem:[#allocation15_spill] sm:$0xff] }
 0x2d9   : > { %1578 = vst [vmem:[%s2909_s28 + $0xa0] sm:$0xff] %v1494_v3  ;;  %v1498_v50 = vadd.f32 %v1432_v18, %v1354_v0  ;;  %v1499_v29 = vadd.f32 %v1432_v18, %v1355_v47  ;;  %v1500_v31 = vadd.f32 %v1432_v18, %v1356_v35  ;;  %v1501_v54 = vadd.f32 %v1432_v18, %v1357_v60  ;;  %v3322_v0 = vld [vmem:[#allocation16_spill] sm:$0xff]  ;;  %v3323_v35 = vld [vmem:[#allocation19_spill] sm:$0xff]  ;;  %v3328_v18 = vld [vmem:[#allocation17_spill] sm:$0xff] }
 0x2da   : > { %1579 = vst [vmem:[%s2909_s28 + $0xa8] sm:$0xff] %v1495_v20  ;;  %1580 = vst [vmem:[%s2909_s28 + $0xb0] sm:$0xff] %v1496_v28  ;;  %v1371_v23 = vmul.f32 %v2878_v27, %v3320_v45  ;;  %v1379_v3 = vmul.f32 %v2882_v1, %v3321_v14  ;;  %v1380_v47 = vmul.f32 %v2882_v1, %v3322_v0  ;;  %v3329_v28 = vld [vmem:[#allocation18_spill] sm:$0xff]  ;;  %v3344_v0 = vld [vmem:[#allocation56_spill] sm:$0xff] }
 0x2db   : > { %1581 = vst [vmem:[%s2909_s28 + $0xb8] sm:$0xff] %v1497_v59  ;;  %1582 = vst [vmem:[%s2909_s28 + $0xc0] sm:$0xff] %v1498_v50  ;;  %v1437_v5 = vpop.permute.xlu0 %1436  ;;  %v1381_v60 = vmul.f32 %v2882_v1, %v3323_v35  ;;  %v1374_v20 = vmul.f32 %v2880_v12, %v3328_v18  ;;  %v1375_v59 = vmul.f32 %v2880_v12, %v3329_v28  ;;  %v3330_v50 = vld [vmem:[#allocation52_spill] sm:$0xff]  ;;  %v3343_v14 = vld [vmem:[#allocation26_spill] sm:$0xff] }
 0x2dc   : > { %1583 = vst [vmem:[%s2909_s28 + $0xc8] sm:$0xff] %v1499_v29  ;;  %1584 = vst [vmem:[%s2909_s28 + $0xd0] sm:$0xff] %v1500_v31  ;;  %v1502_v13 = vadd.f32 %v1437_v5, %v1358_v16  ;;  %v1503_v38 = vadd.f32 %v1437_v5, %v1359_v17  ;;  %v1504_v30 = vadd.f32 %v1437_v5, %v1360_v21  ;;  %v3332_v31 = vld [vmem:[#allocation50_spill] sm:$0xff]  ;;  %v3345_v35 = vld [vmem:[#allocation53_spill] sm:$0xff] }
 0x2dd   : > { %1585 = vst [vmem:[%s2909_s28 + $0xd8] sm:$0xff] %v1501_v54  ;;  %v1505_v46 = vadd.f32 %v1437_v5, %v1361_v22  ;;  %v1506_v39 = vadd.f32 %v1437_v5, %v1362_v37  ;;  %v1507_v43 = vadd.f32 %v1437_v5, %v1363_v49  ;;  %v1508_v53 = vadd.f32 %v1437_v5, %v1364_v63  ;;  %v1442_v41 = vpop.permute.xlu1 %1441  ;;  %v3334_v22 = vld [vmem:[#allocation39_spill] sm:$0xff] }
 0x2de   : > { %1586 = vst [vmem:[%s2909_s28 + $0xe0] sm:$0xff] %v1502_v13  ;;  %1587 = vst [vmem:[%s2909_s28 + $0xe8] sm:$0xff] %v1503_v38  ;;  %v1509_v55 = vadd.f32 %v1442_v41, %v1365_v56  ;;  %v1510_v2 = vadd.f32 %v1442_v41, %v1366_v15  ;;  %v1511_v61 = vadd.f32 %v1442_v41, %v1367_v4  ;;  %v3335_v38 = vld [vmem:[#allocation23_spill] sm:$0xff] }
 0x2df   : > { %1588 = vst [vmem:[%s2909_s28 + $0xf0] sm:$0xff] %v1504_v30  ;;  %1589 = vst [vmem:[%s2909_s28 + $0xf8] sm:$0xff] %v1505_v46  ;;  %v1512_v24 = vadd.f32 %v1442_v41, %v1368_v10  ;;  %v1513_v27 = vadd.f32 %v1442_v41, %v1369_v52  ;;  %v1514_v48 = vadd.f32 %v1442_v41, %v1370_v26  ;;  %v3331_v52 = vld [vmem:[#allocation49_spill] sm:$0xff]  ;;  %v3336_v46 = vld [vmem:[#allocation24_spill] sm:$0xff] }
 0x2e0   : > { %1590 = vst [vmem:[%s2909_s28 + $0x100] sm:$0xff] %v1506_v39  ;;  %1591 = vst [vmem:[%s2909_s28 + $0x108] sm:$0xff] %v1507_v43  ;;  %v1515_v42 = vadd.f32 %v1442_v41, %v1371_v23  ;;  %v1382_v56 = vmul.f32 %v2882_v1, %v3324_v58  ;;  %v1383_v15 = vmul.f32 %v2882_v1, %v3325_v11  ;;  %v3337_v23 = vld [vmem:[#allocation27_spill] sm:$0xff]  ;;  %v3338_v43 = vld [vmem:[#allocation28_spill] sm:$0xff] }
 0x2e1   : > { %1592 = vst [vmem:[%s2909_s28 + $0x110] sm:$0xff] %v1508_v53  ;;  %1593 = vst [vmem:[%s2909_s28 + $0x118] sm:$0xff] %v1509_v55  ;;  %v1372_v4 = vmul.f32 %v2880_v12, %v3326_v62  ;;  %v1373_v10 = vmul.f32 %v2880_v12, %v3327_v19  ;;  %v1384_v7 = vmul.f32 %v2882_v1, %v3330_v50  ;;  %v3339_v41 = vld [vmem:[#allocation55_spill] sm:$0xff]  ;;  %v3346_v58 = vld [vmem:[#allocation54_spill] sm:$0xff] }
 0x2e2   : > { %1594 = vst [vmem:[%s2909_s28 + $0x120] sm:$0xff] %v1510_v2  ;;  %1595 = vst [vmem:[%s2909_s28 + $0x128] sm:$0xff] %v1511_v61  ;;  %v1376_v29 = vmul.f32 %v2880_v12, %v3331_v52  ;;  %v1377_v54 = vmul.f32 %v2880_v12, %v3332_v31  ;;  %v1378_v16 = vmul.f32 %v3333_v9, %v2880_v12  ;;  %v3340_v2 = vld [vmem:[#allocation21_spill] sm:$0xff]  ;;  %v3347_v11 = vld [vmem:[#allocation46_spill] sm:$0xff] }
 0x2e3   : > { %1596 = vst [vmem:[%s2909_s28 + $0x130] sm:$0xff] %v1512_v24  ;;  %1597 = vst [vmem:[%s2909_s28 + $0x138] sm:$0xff] %v1513_v27  ;;  %v1447_v32 = vpop.permute.xlu0 %1446  ;;  %v1385_v44 = vmul.f32 %v3334_v22, %v2882_v1  ;;  %v1393_v30 = vmul.f32 %v2886_v51, %v3335_v38  ;;  %v1394_v45 = vmul.f32 %v2886_v51, %v3336_v46  ;;  %v3341_v24 = vld [vmem:[#allocation22_spill] sm:$0xff] }
 0x2e4   : > { %1598 = vst [vmem:[%s2909_s28 + $0x140] sm:$0xff] %v1514_v48  ;;  %1599 = vst [vmem:[%s2909_s28 + $0x148] sm:$0xff] %v1515_v42  ;;  %v1516_v17 = vadd.f32 %v1447_v32, %v1372_v4  ;;  %v1517_v25 = vadd.f32 %v1447_v32, %v1373_v10  ;;  %v1518_v21 = vadd.f32 %v1447_v32, %v1374_v20  ;;  %v3342_v48 = vld [vmem:[#allocation25_spill] sm:$0xff]  ;;  %v3348_v20 = vld [vmem:[#allocation48_spill] sm:$0xff] }
 0x2e5   : > { %v1519_v33 = vadd.f32 %v1447_v32, %v1375_v59  ;;  %v1520_v26 = vadd.f32 %v1447_v32, %v1376_v29  ;;  %v1521_v34 = vadd.f32 %v1447_v32, %v1377_v54  ;;  %v1522_v37 = vadd.f32 %v1447_v32, %v1378_v16  ;;  %v1452_v36 = vpop.permute.xlu1 %1451  ;;  %v3349_v32 = vld [vmem:[#allocation31_spill] sm:$0xff] }
 0x2e6   : > { %1600 = vst [vmem:[%s2909_s28 + $0x150] sm:$0xff] %v1516_v17  ;;  %1601 = vst [vmem:[%s2909_s28 + $0x158] sm:$0xff] %v1517_v25  ;;  %v1523_v12 = vadd.f32 %v1452_v36, %v1379_v3  ;;  %v1524_v49 = vadd.f32 %v1452_v36, %v1380_v47  ;;  %v1525_v40 = vadd.f32 %v1452_v36, %v1381_v60  ;;  %v3350_v25 = vld [vmem:[#allocation32_spill] sm:$0xff] }
 0x2e7   : > { %1602 = vst [vmem:[%s2909_s28 + $0x160] sm:$0xff] %v1518_v21  ;;  %1603 = vst [vmem:[%s2909_s28 + $0x168] sm:$0xff] %v1519_v33  ;;  %v1526_v63 = vadd.f32 %v1452_v36, %v1382_v56  ;;  %v1527_v1 = vadd.f32 %v1452_v36, %v1383_v15  ;;  %v1528_v5 = vadd.f32 %v1452_v36, %v1384_v7  ;;  %v3351_v33 = vld [vmem:[#allocation35_spill] sm:$0xff] }
 0x2e8   : > { %1604 = vst [vmem:[%s2909_s28 + $0x170] sm:$0xff] %v1520_v26  ;;  %1605 = vst [vmem:[%s2909_s28 + $0x178] sm:$0xff] %v1521_v34  ;;  %v1529_v13 = vadd.f32 %v1452_v36, %v1385_v44  ;;  %v1395_v39 = vmul.f32 %v2886_v51, %v3337_v23  ;;  %v1396_v53 = vmul.f32 %v2886_v51, %v3338_v43  ;;  %v3352_v44 = vld [vmem:[#allocation36_spill] sm:$0xff]  ;;  %v3353_v34 = vld [vmem:[#allocation59_spill] sm:$0xff] }
 0x2e9   : > { %1606 = vst [vmem:[%s2909_s28 + $0x180] sm:$0xff] %v1522_v37  ;;  %1607 = vst [vmem:[%s2909_s28 + $0x188] sm:$0xff] %v1523_v12  ;;  %v1397_v55 = vmul.f32 %v2886_v51, %v3339_v41  ;;  %v1386_v61 = vmul.f32 %v2884_v6, %v3340_v2  ;;  %v1387_v27 = vmul.f32 %v2884_v6, %v3341_v24  ;;  %v3354_v36 = vld [vmem:[#allocation29_spill] sm:$0xff] }
 0x2ea   : > { %1608 = vst [vmem:[%s2909_s28 + $0x190] sm:$0xff] %v1524_v49  ;;  %1609 = vst [vmem:[%s2909_s28 + $0x198] sm:$0xff] %v1525_v40  ;;  %v1388_v42 = vmul.f32 %v2884_v6, %v3342_v48  ;;  %v1389_v3 = vmul.f32 %v2884_v6, %v3343_v14  ;;  %v1398_v47 = vmul.f32 %v2886_v51, %v3344_v0  ;;  %v3355_v49 = vld [vmem:[#allocation30_spill] sm:$0xff]  ;;  %v3362_v14 = vld [vmem:[#allocation47_spill] sm:$0xff] }
 0x2eb   : > { %1610 = vst [vmem:[%s2909_s28 + $0x1a0] sm:$0xff] %v1526_v63  ;;  %1611 = vst [vmem:[%s2909_s28 + $0x1a8] sm:$0xff] %v1527_v1  ;;  %v1390_v60 = vmul.f32 %v2884_v6, %v3345_v35  ;;  %v1391_v56 = vmul.f32 %v2884_v6, %v3346_v58  ;;  %v1392_v15 = vmul.f32 %v2884_v6, %v3347_v11  ;;  %v1457_v62 = vpop.permute.xlu0 %1456  ;;  %v3356_v63 = vld [vmem:[#allocation33_spill] sm:$0xff] }
 0x2ec   : > { %1612 = vst [vmem:[%s2909_s28 + $0x1b0] sm:$0xff] %v1528_v5  ;;  %1613 = vst [vmem:[%s2909_s28 + $0x1b8] sm:$0xff] %v1529_v13  ;;  %v1530_v4 = vadd.f32 %v1457_v62, %v1386_v61  ;;  %v1531_v19 = vadd.f32 %v1457_v62, %v1387_v27  ;;  %v1532_v10 = vadd.f32 %v1457_v62, %v1388_v42  ;;  %v3357_v5 = vld [vmem:[#allocation34_spill] sm:$0xff] }
 0x2ed   : > { %v1533_v18 = vadd.f32 %v1457_v62, %v1389_v3  ;;  %v1399_v28 = vmul.f32 %v2886_v51, %v3348_v20  ;;  %v1534_v59 = vadd.f32 %v1457_v62, %v1390_v60  ;;  %v1535_v50 = vadd.f32 %v1457_v62, %v1391_v56  ;;  %v1462_v52 = vpop.permute.xlu1 %1461 }
 0x2ee   : > { %v1536_v7 = vadd.f32 %v1457_v62, %v1392_v15  ;;  %1614 = vst [vmem:[%s2909_s28 + $0x1c0] sm:$0xff] %v1530_v4  ;;  %1615 = vst [vmem:[%s2909_s28 + $0x1c8] sm:$0xff] %v1531_v19  ;;  %v1537_v6 = vadd.f32 %v1462_v52, %v1393_v30  ;;  %v1538_v29 = vadd.f32 %v1462_v52, %v1394_v45  ;;  %v3358_v30 = vld [vmem:[#allocation57_spill] sm:$0xff]  ;;  %v3359_v45 = vld [vmem:[#allocation58_spill] sm:$0xff] }
 0x2ef   : > { %1616 = vst [vmem:[%s2909_s28 + $0x1d0] sm:$0xff] %v1532_v10  ;;  %1617 = vst [vmem:[%s2909_s28 + $0x1d8] sm:$0xff] %v1533_v18  ;;  %v1539_v31 = vadd.f32 %v1462_v52, %v1395_v39  ;;  %v1540_v54 = vadd.f32 %v1462_v52, %v1396_v53  ;;  %v1541_v51 = vadd.f32 %v1462_v52, %v1397_v55  ;;  %v3360_v39 = vld [vmem:[#allocation45_spill] sm:$0xff]  ;;  %v3361_v53 = vld [vmem:[#allocation60_spill] sm:$0xff] }
 0x2f0   : > { %1618 = vst [vmem:[%s2909_s28 + $0x1e0] sm:$0xff] %v1534_v59  ;;  %1619 = vst [vmem:[%s2909_s28 + $0x1e8] sm:$0xff] %v1535_v50  ;;  %v1542_v9 = vadd.f32 %v1462_v52, %v1398_v47  ;;  %v1543_v16 = vadd.f32 %v1462_v52, %v1399_v28  ;;  %v1407_v17 = vmul.f32 %v2898_v8, %v3349_v32 }
 0x2f1   : > { %1620 = vst [vmem:[%s2909_s28 + $0x1f0] sm:$0xff] %v1536_v7  ;;  %1621 = vst [vmem:[%s2909_s28 + $0x1f8] sm:$0xff] %v1537_v6  ;;  %v1408_v21 = vmul.f32 %v2898_v8, %v3350_v25  ;;  %v1409_v22 = vmul.f32 %v2898_v8, %v3351_v33  ;;  %v1410_v26 = vmul.f32 %v2898_v8, %v3352_v44 }
 0x2f2   : > { %1622 = vst [vmem:[%s2909_s28 + $0x200] sm:$0xff] %v1538_v29  ;;  %1623 = vst [vmem:[%s2909_s28 + $0x208] sm:$0xff] %v1539_v31  ;;  %v1411_v37 = vmul.f32 %v2898_v8, %v3353_v34  ;;  %v1400_v12 = vmul.f32 %v2889_v57, %v3354_v36  ;;  %v1401_v40 = vmul.f32 %v2889_v57, %v3355_v49 }
 0x2f3   : > { %1624 = vst [vmem:[%s2909_s28 + $0x210] sm:$0xff] %v1540_v54  ;;  %1625 = vst [vmem:[%s2909_s28 + $0x218] sm:$0xff] %v1541_v51  ;;  %v1402_v1 = vmul.f32 %v2889_v57, %v3356_v63  ;;  %v1403_v13 = vmul.f32 %v2889_v57, %v3357_v5  ;;  %v1467_v38 = vpop.permute.xlu0 %1466  ;;  %v1404_v46 = vmul.f32 %v2889_v57, %v3358_v30 }
 0x2f4   : > { %1626 = vst [vmem:[%s2909_s28 + $0x220] sm:$0xff] %v1542_v9  ;;  %1627 = vst [vmem:[%s2909_s28 + $0x228] sm:$0xff] %v1543_v16  ;;  %v1405_v23 = vmul.f32 %v2889_v57, %v3359_v45  ;;  %v1406_v43 = vmul.f32 %v3360_v39, %v2889_v57  ;;  %v1412_v41 = vmul.f32 %v2898_v8, %v3361_v53 }
 0x2f5   : > { %v1544_v55 = vadd.f32 %v1467_v38, %v1400_v12  ;;  %v1545_v2 = vadd.f32 %v1467_v38, %v1401_v40  ;;  %v1546_v61 = vadd.f32 %v1467_v38, %v1402_v1  ;;  %v1547_v24 = vadd.f32 %v1467_v38, %v1403_v13  ;;  %v1472_v0 = vpop.permute.xlu1 %1471 }
 0x2f6   : > { %v1548_v27 = vadd.f32 %v1467_v38, %v1404_v46  ;;  %v1549_v48 = vadd.f32 %v1467_v38, %v1405_v23  ;;  %v1550_v42 = vadd.f32 %v1467_v38, %v1406_v43  ;;  %v1413_v3 = vmul.f32 %v3362_v14, %v2898_v8 }
 0x2f7   : > { %1628 = vst [vmem:[%s2909_s28 + $0x230] sm:$0xff] %v1544_v55  ;;  %1629 = vst [vmem:[%s2909_s28 + $0x238] sm:$0xff] %v1545_v2  ;;  %v1551_v57 = vadd.f32 %v1472_v0, %v1407_v17  ;;  %v1552_v47 = vadd.f32 %v1472_v0, %v1408_v21  ;;  %v1553_v35 = vadd.f32 %v1472_v0, %v1409_v22 }
 0x2f8   : > { %1630 = vst [vmem:[%s2909_s28 + $0x240] sm:$0xff] %v1546_v61  ;;  %1631 = vst [vmem:[%s2909_s28 + $0x248] sm:$0xff] %v1547_v24  ;;  %v1554_v60 = vadd.f32 %v1472_v0, %v1410_v26  ;;  %v1555_v8 = vadd.f32 %v1472_v0, %v1411_v37  ;;  %v1556_v58 = vadd.f32 %v1472_v0, %v1412_v41 }
 0x2f9   : > { %1632 = vst [vmem:[%s2909_s28 + $0x250] sm:$0xff] %v1548_v27  ;;  %1633 = vst [vmem:[%s2909_s28 + $0x258] sm:$0xff] %v1549_v48  ;;  %v1557_v56 = vadd.f32 %v1472_v0, %v1413_v3 }
 0x2fa   : > { %1634 = vst [vmem:[%s2909_s28 + $0x260] sm:$0xff] %v1550_v42  ;;  %1635 = vst [vmem:[%s2909_s28 + $0x268] sm:$0xff] %v1551_v57 }
 0x2fb   : > { %1636 = vst [vmem:[%s2909_s28 + $0x270] sm:$0xff] %v1552_v47  ;;  %1637 = vst [vmem:[%s2909_s28 + $0x278] sm:$0xff] %v1553_v35 }
 0x2fc   : > { %1638 = vst [vmem:[%s2909_s28 + $0x280] sm:$0xff] %v1554_v60  ;;  %1639 = vst [vmem:[%s2909_s28 + $0x288] sm:$0xff] %v1555_v8 }
 0x2fd   : > { %1640 = vst [vmem:[%s2909_s28 + $0x290] sm:$0xff] %v1556_v58  ;;  %1641 = vst [vmem:[%s2909_s28 + $0x298] sm:$0xff] %v1557_v56 }
 0x2fe   : > { %1938 = shalt.err (!%p1935_p3)
}
 0x2ff   : > { %s1939_s20 = scalar_lea.hbm %s3130_s8, 10752  ;;  %s1943_s23 = scalar_lea.hbm %s3191_s4, 21504 }
 0x300   : > { %p1940_p4 = scmp.ne.s32.totalorder %s3130_s8, %s1939_s20  ;;  %p1944_p9 = scmp.lt.u32.totalorder %s3130_s8, %s3191_s4 }
 0x301   : > { %p1945_p10 = scmp.lt.u32.totalorder %s1943_s23, %s1939_s20  ;;  %p1947_p12 = scmp.lt.u32.totalorder %s1939_s20, %s3130_s8 }
 0x302   : > { %p1941_p7 = pnand %p1940_p4, %p2058_p5 }
 0x303   : > { %p1946_p11 = por %p1945_p10, %p1944_p9 }
 0x304   : > { %p1942_p8 = pneg %p1941_p7 }
 0x305   : > { %p1948_p13 = por %p1947_p12, %p1946_p11 }
 0x307   : > { %p1949_p0 = pnand %p1948_p13, %p1942_p8 }
 0x309   : > { %1952 = shalt.err (!%p1949_p0)
}
 0x30a   : > { %s1993_s27 = smov 896   ;;  %s1994_s28 = smov 56  }
 0x30b   : > { %1852 = dma.vmem_to_hbm [thread:$0]  (%p2058_p5), %s3132_s5, 10752, %s3130_s8, %s3146_s9, %s1993_s27, %s1993_s27, %s1994_s28  }
 0x30c PF: > { %p1859_p1 = scmp.ge.s32.totalorder %s1987_s18, 2  ;;  %s1672_s30 = sand.u32 1, %s1975_s15  }
 0x30d   : > { %s1673_s19 = scalar_lea.sflag [#allocation3], %s1672_s30 }
 0x30e   : > { %p1855_p2 = pnand %p1859_p1, %p2062_p6 }
 0x310   : > { %1970 = dma.done.wait (!%p1855_p2), %s1673_s19, 10752  }
 0x311   : > { %1972 = vsyncadd (!%p1855_p2), %s1673_s19, 4294956544  ;;  %p14_p3 = scmp.ge.s32.totalorder %s2045_s21, 4   ;;  %s3363_s15 = smov %s1979_s16 }
 0x312   : > { %s3364_s16 = smov %s1983_s17  ;;  %s3365_s17 = smov %s2056_s24 }
 0x313   : > { %s3366_s18 = smov %s2045_s21  ;;  %16 = sbr.rel (!%p14_p3) target bundleno = 3 (0x3), region = 74 }
 0x31a   :  { %1678 = vsyncpa [#allocation3], 1 }
 0x31b   :  { %1680 = vsyncpa [#allocation3 + $0x1], 1 }

</bundles_post_ra>
